<compile_context>
chip_gen: v6e
topology: v6e:2x2x1
jax: 0.10.0
libtpu: 0.0.40
codegen_flags: <defaults>
</compile_context>

<pallas_src>
import jax
import jax.numpy as jnp
from jax import lax
from jax.experimental import pallas as pl
from jax.experimental.pallas import tpu as pltpu


def _round_up(v, m):
    return (v + m - 1) // m * m


def nabla2d_kernel(x_ref, srcr_ref, dstr_ref, srcc_ref, coeff_ref, invcnt_ref, out_ref):
    # x_ref     : (1, Np)   node scalar (row vector), resident every step
    # srcr_ref  : (1, tE)   src indices (lane-oriented)   int32
    # dstr_ref  : (1, tE)   dst indices (lane-oriented)   int32
    # srcc_ref  : (tE, 1)   src indices (sublane-oriented) int32
    # coeff_ref : (8, tE)   row0 = mask_x/attr_x, row1 = mask_y/attr_y, rows 2..7 = 0
    # invcnt_ref: (8, Np)   row0/1 = 1/max(count,1), rows 2..7 = 1
    # out_ref   : (8, Np)   accumulator / output; rows 0/1 = d/dx, d/dy
    k = pl.program_id(0)
    nsteps = pl.num_programs(0)

    np_ = x_ref.shape[1]
    te = srcr_ref.shape[1]

    x = x_ref[...]                                     # (1, Np)
    src_r = srcr_ref[...]                              # (1, tE)
    dst_r = dstr_ref[...]                              # (1, tE)

    # Gather matrix G (Np, tE): G[n, e] = (dst[e]==n) - (src[e]==n), built in VMEM.
    n_iota = lax.broadcasted_iota(jnp.int32, (np_, te), 0)
    g = (dst_r == n_iota).astype(jnp.float32) - (src_r == n_iota).astype(jnp.float32)

    # diff[e] = x[dst(e)] - x[src(e)]
    diff = jnp.dot(x, g, preferred_element_type=jnp.float32)        # (1, tE)

    # Per-direction local derivatives, fused into an 8-row LHS (rows 2..7 are zero).
    local = diff * coeff_ref[...]                                   # (8, tE)

    # Scatter matrix S (tE, Np): S[e, n] = (src[e]==n).
    src_c = srcc_ref[...]                                           # (tE, 1)
    l_iota = lax.broadcasted_iota(jnp.int32, (te, np_), 1)
    s = (src_c == l_iota).astype(jnp.float32)                       # (tE, Np)

    contrib = jnp.dot(local, s, preferred_element_type=jnp.float32)  # (8, Np)

    @pl.when(k == 0)
    def _():
        out_ref[...] = jnp.zeros_like(out_ref)

    out_ref[...] += contrib

    @pl.when(k == nsteps - 1)
    def _():
        out_ref[...] = out_ref[...] * invcnt_ref[...]   # scatter_mean (empty -> 0)


class Nabla2DOperator:
    """JAX/Pallas port of the PyTorch Nabla2DOperator."""

    def __init__(self, delta_x, delta_y, index_derivative_node=0,
                 index_derivative_x=0, index_derivative_y=1, edge_tile=512):
        self.delta_x = delta_x
        self.delta_y = delta_y
        self.index_derivative_node = index_derivative_node
        self.index_derivative_x = index_derivative_x
        self.index_derivative_y = index_derivative_y
        self.edge_tile = edge_tile

    def __call__(self, x, edge_index, edge_attr):
        # x:          (N, F_node) float32
        # edge_index: (2, E)      int32
        # edge_attr:  (E, F_edge) float32
        N = x.shape[0]
        E = edge_index.shape[1]
        TE = self.edge_tile
        Np = _round_up(max(N, 128), 128)
        Ep = _round_up(max(E, 1), TE)

        src = edge_index[0].astype(jnp.int32)
        dst = edge_index[1].astype(jnp.int32)

        def dir_coeff_and_cnt(col):
            a = edge_attr[:, col].astype(jnp.float32)
            m = a != 0
            c = jnp.where(m, 1.0 / jnp.where(m, a, 1.0), 0.0)       # 0 on masked edges
            cnt = jax.ops.segment_sum(m.astype(jnp.float32), src, num_segments=Np)
            return c, 1.0 / jnp.maximum(cnt, 1.0)

        c_x, inv_x = dir_coeff_and_cnt(self.index_derivative_x)
        c_y, inv_y = dir_coeff_and_cnt(self.index_derivative_y)

        pad_e = Ep - E
        # Padded edges: src=dst=0 and coeff=0 -> zero gather column, zero contribution.
        src_p = jnp.pad(src, (0, pad_e))
        dst_p = jnp.pad(dst, (0, pad_e))

        coeff = jnp.zeros((8, Ep), jnp.float32)
        coeff = coeff.at[0, :E].set(c_x).at[1, :E].set(c_y)          # rows 2..7 stay 0

        inv_cnt = jnp.ones((8, Np), jnp.float32)
        inv_cnt = inv_cnt.at[0].set(inv_x).at[1].set(inv_y)

        x_row = jnp.pad(x[:, self.index_derivative_node].astype(jnp.float32),
                        (0, Np - N)).reshape(1, Np)
        src_row = src_p.reshape(1, Ep)
        dst_row = dst_p.reshape(1, Ep)
        src_col = src_p.reshape(Ep, 1)

        grid = (Ep // TE,)

        out = pl.pallas_call(
            nabla2d_kernel,
            out_shape=jax.ShapeDtypeStruct((8, Np), jnp.float32),
            grid=grid,
            in_specs=[
                pl.BlockSpec((1, Np), lambda k: (0, 0)),   # x_row (resident)
                pl.BlockSpec((1, TE), lambda k: (0, k)),   # src (lane)
                pl.BlockSpec((1, TE), lambda k: (0, k)),   # dst (lane)
                pl.BlockSpec((TE, 1), lambda k: (k, 0)),   # src (sublane)
                pl.BlockSpec((8, TE), lambda k: (0, k)),   # coeffs
                pl.BlockSpec((8, Np), lambda k: (0, 0)),   # inv counts (resident)
            ],
            out_specs=pl.BlockSpec((8, Np), lambda k: (0, 0)),
            compiler_params=pltpu.CompilerParams(
                dimension_semantics=("arbitrary",),        # edge axis is a reduction
                vmem_limit_bytes=32 * 1024 * 1024,
            ),
        )(x_row, src_row, dst_row, src_col, coeff, inv_cnt)

        return out[0:2, :N].T                              # (N, 2)


def _reference(x, edge_index, edge_attr, node_col=0):
    """Pure-JAX reference of the same semantics (for correctness check)."""
    N = x.shape[0]
    src, dst = edge_index[0], edge_index[1]
    cols = []
    for d in (0, 1):
        a = edge_attr[:, d]
        m = a != 0
        local = jnp.where(m, (x[dst, node_col] - x[src, node_col])
                          / jnp.where(m, a, 1.0), 0.0)
        ssum = jax.ops.segment_sum(local, src, num_segments=N)
        cnt = jax.ops.segment_sum(m.astype(jnp.float32), src, num_segments=N)
        cols.append(ssum / jnp.maximum(cnt, 1.0))
    return jnp.stack(cols, axis=1)


def _build_grid_graph(side, delta_x, delta_y):
    """Regular side x side grid, 4-neighbour bidirectional edges, attr = (dx, dy)."""
    srcs, dsts, attrs = [], [], []
    nid = lambda i, j: i * side + j
    for i in range(side):
        for j in range(side):
            if j + 1 < side:  # horizontal
                srcs += [nid(i, j), nid(i, j + 1)]
                dsts += [nid(i, j + 1), nid(i, j)]
                attrs += [(delta_x, 0.0), (-delta_x, 0.0)]
            if i + 1 < side:  # vertical
                srcs += [nid(i, j), nid(i + 1, j)]
                dsts += [nid(i + 1, j), nid(i, j)]
                attrs += [(0.0, delta_y), (0.0, -delta_y)]
    edge_index = jnp.array([srcs, dsts], dtype=jnp.int32)
    edge_attr = jnp.array(attrs, dtype=jnp.float32)
    return edge_index, edge_attr


if __name__ == "__main__":
    side = 12                      # N = 144 nodes, E = 528 edges -> 2 edge tiles of 512
    delta_x = delta_y = 1.0 / side

    key = jax.random.PRNGKey(0)
    x = jax.random.normal(key, (side * side, 1), dtype=jnp.float32)   # node features
    edge_index, edge_attr = _build_grid_graph(side, delta_x, delta_y)

    op = Nabla2DOperator(delta_x=delta_x, delta_y=delta_y)
    nabla2d = op(x, edge_index, edge_attr)
    jax.block_until_ready(nabla2d)

    ref = _reference(x, edge_index, edge_attr)
    assert nabla2d.shape == (side * side, 2)
    assert jnp.allclose(nabla2d, ref, atol=1e-5, rtol=1e-5), "mismatch vs reference"

    print("KERNEL_OK")
</pallas_src>

<mosaic_0001>
module attributes {stable_mosaic.version = 11 : i64} {
  func.func @nabla2d_kernel(%arg0: i32, %arg1: memref<1x256xf32, #tpu.memory_space<vmem>>, %arg2: memref<1x512xi32, #tpu.memory_space<vmem>>, %arg3: memref<1x512xi32, #tpu.memory_space<vmem>>, %arg4: memref<512x1xi32, #tpu.memory_space<vmem>>, %arg5: memref<8x512xf32, #tpu.memory_space<vmem>>, %arg6: memref<8x256xf32, #tpu.memory_space<vmem>>, %arg7: memref<8x256xf32, #tpu.memory_space<vmem>>) attributes {dimension_semantics = [#tpu.dimension_semantics<arbitrary>], iteration_bounds = array<i64: 2>, scalar_prefetch = 0 : i64, scratch_operands = 0 : i64, tpu.core_type = #tpu.core_type<tc>, window_params = [{pipeline_mode = #tpu.pipeline_mode<synchronous>, transform_indices = @transform_0, window_bounds = array<i64: 1, 256>}, {transform_indices = @transform_1, window_bounds = array<i64: 1, 512>}, {transform_indices = @transform_2, window_bounds = array<i64: 1, 512>}, {transform_indices = @transform_3, window_bounds = array<i64: 512, 1>}, {transform_indices = @transform_4, window_bounds = array<i64: 8, 512>}, {pipeline_mode = #tpu.pipeline_mode<synchronous>, transform_indices = @transform_5, window_bounds = array<i64: 8, 256>}, {pipeline_mode = #tpu.pipeline_mode<synchronous>, transform_indices = @transform_6, window_bounds = array<i64: 8, 256>}]} {
    %c0 = arith.constant 0 : index
    %c0_0 = arith.constant 0 : index
    %0 = vector.load %arg1[%c0, %c0_0] : memref<1x256xf32, #tpu.memory_space<vmem>>, vector<1x256xf32>
    %c0_1 = arith.constant 0 : index
    %c0_2 = arith.constant 0 : index
    %1 = vector.load %arg2[%c0_1, %c0_2] : memref<1x512xi32, #tpu.memory_space<vmem>>, vector<1x512xi32>
    %c0_3 = arith.constant 0 : index
    %c0_4 = arith.constant 0 : index
    %2 = vector.load %arg3[%c0_3, %c0_4] : memref<1x512xi32, #tpu.memory_space<vmem>>, vector<1x512xi32>
    %3 = tpu.iota {dimensions = array<i32: 0>} : vector<256x512xi32>
    %4 = vector.broadcast %2 : vector<1x512xi32> to vector<256x512xi32>
    %5 = arith.cmpi eq, %4, %3 : vector<256x512xi32>
    %6 = arith.extui %5 : vector<256x512xi1> to vector<256x512xi32>
    %7 = arith.sitofp %6 : vector<256x512xi32> to vector<256x512xf32>
    %8 = vector.broadcast %1 : vector<1x512xi32> to vector<256x512xi32>
    %9 = arith.cmpi eq, %8, %3 : vector<256x512xi32>
    %10 = arith.extui %9 : vector<256x512xi1> to vector<256x512xi32>
    %11 = arith.sitofp %10 : vector<256x512xi32> to vector<256x512xf32>
    %12 = arith.subf %7, %11 : vector<256x512xf32>
    %cst = arith.constant dense<0.000000e+00> : vector<1x512xf32>
    %13 = tpu.matmul %0, %12, %cst {dimension_numbers = #tpu.dot_dimension_numbers<[1], [0], [0], [1], [0, 0, 1, 1], [], []>} : vector<1x256xf32>, vector<256x512xf32>, vector<1x512xf32> -> vector<1x512xf32>
    %c0_5 = arith.constant 0 : index
    %c0_6 = arith.constant 0 : index
    %14 = vector.load %arg5[%c0_5, %c0_6] : memref<8x512xf32, #tpu.memory_space<vmem>>, vector<8x512xf32>
    %15 = vector.broadcast %13 : vector<1x512xf32> to vector<8x512xf32>
    %16 = arith.mulf %15, %14 : vector<8x512xf32>
    %c0_7 = arith.constant 0 : index
    %c0_8 = arith.constant 0 : index
    %17 = vector.load %arg4[%c0_7, %c0_8] : memref<512x1xi32, #tpu.memory_space<vmem>>, vector<512x1xi32>
    %18 = tpu.iota {dimensions = array<i32: 1>} : vector<512x256xi32>
    %19 = vector.broadcast %17 : vector<512x1xi32> to vector<512x256xi32>
    %20 = arith.cmpi eq, %19, %18 : vector<512x256xi32>
    %21 = arith.extui %20 : vector<512x256xi1> to vector<512x256xi32>
    %22 = arith.sitofp %21 : vector<512x256xi32> to vector<512x256xf32>
    %cst_9 = arith.constant dense<0.000000e+00> : vector<8x256xf32>
    %23 = tpu.matmul %16, %22, %cst_9 {dimension_numbers = #tpu.dot_dimension_numbers<[1], [0], [0], [1], [0, 0, 1, 1], [], []>} : vector<8x512xf32>, vector<512x256xf32>, vector<8x256xf32> -> vector<8x256xf32>
    %c0_i32 = arith.constant 0 : i32
    %24 = arith.cmpi eq, %arg0, %c0_i32 : i32
    %25 = arith.extui %24 : i1 to i32
    %c0_i32_10 = arith.constant 0 : i32
    %26 = arith.cmpi ne, %25, %c0_i32_10 : i32
    scf.if %26 {
      %cst_16 = arith.constant 0.000000e+00 : f32
      %33 = vector.broadcast %cst_16 : f32 to vector<8x256xf32>
      %c0_17 = arith.constant 0 : index
      %c0_18 = arith.constant 0 : index
      %34 = vector.load %arg7[%c0_17, %c0_18] : memref<8x256xf32, #tpu.memory_space<vmem>>, vector<8x256xf32>
      tpu.vector_store %arg7[%c0_17, %c0_18], %33 {strides = array<i32>} : memref<8x256xf32, #tpu.memory_space<vmem>>, vector<8x256xf32>,
    } else {
    }
    %c0_11 = arith.constant 0 : index
    %c0_12 = arith.constant 0 : index
    %27 = vector.load %arg7[%c0_11, %c0_12] : memref<8x256xf32, #tpu.memory_space<vmem>>, vector<8x256xf32>
    %28 = arith.addf %27, %23 : vector<8x256xf32>
    %c0_13 = arith.constant 0 : index
    %c0_14 = arith.constant 0 : index
    %29 = vector.load %arg7[%c0_13, %c0_14] : memref<8x256xf32, #tpu.memory_space<vmem>>, vector<8x256xf32>
    tpu.vector_store %arg7[%c0_13, %c0_14], %28 {strides = array<i32>} : memref<8x256xf32, #tpu.memory_space<vmem>>, vector<8x256xf32>,
    %c1_i32 = arith.constant 1 : i32
    %30 = arith.cmpi eq, %arg0, %c1_i32 : i32
    %31 = arith.extui %30 : i1 to i32
    %c0_i32_15 = arith.constant 0 : i32
    %32 = arith.cmpi ne, %31, %c0_i32_15 : i32
    scf.if %32 {
      %c0_16 = arith.constant 0 : index
      %c0_17 = arith.constant 0 : index
      %33 = vector.load %arg7[%c0_16, %c0_17] : memref<8x256xf32, #tpu.memory_space<vmem>>, vector<8x256xf32>
      %c0_18 = arith.constant 0 : index
      %c0_19 = arith.constant 0 : index
      %34 = vector.load %arg6[%c0_18, %c0_19] : memref<8x256xf32, #tpu.memory_space<vmem>>, vector<8x256xf32>
      %35 = arith.mulf %33, %34 : vector<8x256xf32>
      %c0_20 = arith.constant 0 : index
      %c0_21 = arith.constant 0 : index
      %36 = vector.load %arg7[%c0_20, %c0_21] : memref<8x256xf32, #tpu.memory_space<vmem>>, vector<8x256xf32>
      tpu.vector_store %arg7[%c0_20, %c0_21], %35 {strides = array<i32>} : memref<8x256xf32, #tpu.memory_space<vmem>>, vector<8x256xf32>,
    } else {
    }
    return
  }
  func.func @transform_0(%arg0: i32) -> (i32, i32) {
    %c0_i32 = arith.constant 0 : i32
    %c0_i32_0 = arith.constant 0 : i32
    %c0_i32_1 = arith.constant 0 : i32
    return %c0_i32, %c0_i32_0 : i32, i32
  }
  func.func @transform_1(%arg0: i32) -> (i32, i32) {
    %c0_i32 = arith.constant 0 : i32
    %c0_i32_0 = arith.constant 0 : i32
    return %c0_i32, %arg0 : i32, i32
  }
  func.func @transform_2(%arg0: i32) -> (i32, i32) {
    %c0_i32 = arith.constant 0 : i32
    %c0_i32_0 = arith.constant 0 : i32
    return %c0_i32, %arg0 : i32, i32
  }
  func.func @transform_3(%arg0: i32) -> (i32, i32) {
    %c0_i32 = arith.constant 0 : i32
    %c0_i32_0 = arith.constant 0 : i32
    return %arg0, %c0_i32 : i32, i32
  }
  func.func @transform_4(%arg0: i32) -> (i32, i32) {
    %c0_i32 = arith.constant 0 : i32
    %c0_i32_0 = arith.constant 0 : i32
    return %c0_i32, %arg0 : i32, i32
  }
  func.func @transform_5(%arg0: i32) -> (i32, i32) {
    %c0_i32 = arith.constant 0 : i32
    %c0_i32_0 = arith.constant 0 : i32
    %c0_i32_1 = arith.constant 0 : i32
    return %c0_i32, %c0_i32_0 : i32, i32
  }
  func.func @transform_6(%arg0: i32) -> (i32, i32) {
    %c0_i32 = arith.constant 0 : i32
    %c0_i32_0 = arith.constant 0 : i32
    %c0_i32_1 = arith.constant 0 : i32
    return %c0_i32, %c0_i32_0 : i32, i32
  }
}

</mosaic_0001>

<bundles_post_ra>
// kernel: tpu_custom_call.1
= control target key start
LH: loop header
LB: loop body
LE: loop exit
PB: predicated region body
PF: predicated region fallthrough
CT: control target
= control target key end

     0   :  { %11 = vsyncpa [#allocation3], 0  ;;  %s2951_s21 = smov 0   ;;  %s4284_s0 = inlined_call_operand.vmem [shape: f32[1,256], index: 0, kind: input, shape index: {}]   ;;  %s4285_s1 = inlined_call_operand.vmem [shape: s32[1,1024], index: 1, kind: input, shape index: {}]   ;;  %s4286_s2 = inlined_call_operand.vmem [shape: s32[1,1024], index: 2, kind: input, shape index: {}]   ;;  %s4287_s3 = inlined_call_operand.vmem [shape: s32[1024,1], index: 3, kind: input, shape index: {}]   ;;  %s4288_s4 = inlined_call_operand.vmem [shape: f32[8,1024], index: 4, kind: input, shape index: {}]   ;;  %s4289_s5 = inlined_call_operand.vmem [shape: f32[8,256], index: 5, kind: input, shape index: {}]   ;;  %s4290_s6 = inlined_call_operand.hbm [shape: f32[8,256], index: 6, kind: output, shape index: {}]  }
   0x1 LB: > { %s2957_s22 = sadd.s32 4294967295, %s2909_s21   ;;  %p2329_p0 = scmp.ge.s32.totalorder %s2909_s21, 1  ;;  %s2909_s21 = sphi %s2951_s21, %s17_s21  }
   0x2   : > { %p240_p1 = scmp.lt.s32.totalorder %s2909_s21, 3 }
   0x4   : > { %p241_p2 = pnand %p2329_p0, %p240_p1 }
   0x5   : > { %s2332_s23 = sshll.u32 (!%p241_p2), %s2957_s22, 6  ;;  %s2330_s24 = sshll.u32 (!%p241_p2), %s2957_s22, 2 }
   0x6   : > { %244 = sbr.rel (%p241_p2) target bundleno = 623 (0x26f), region = 44  ;;  %p289_p3 = scmp.lt.s32.totalorder (!%p241_p2), %s2332_s23, 127 }
   0x7   : > { %p279_p4 = scmp.lt.s32.totalorder (!%p241_p2), %s2330_s24, 7  ;;  %p2848_p5 = scmp.ne.s32.totalorder (!%p241_p2), %s2957_s22, 0 }
   0xb   : > { %v303_v0 = vlaneseq  ;;  %v2911_v1 = vmov 0   ;;  %s4292_s23 = smov (!%p289_p3, %s2332_s23), 127  ;;  %s4294_s24 = smov (!%p279_p4, %s2330_s24), 7  ;;  %v2912_v33 = vmov 0.0  }
   0xc   : > { %2874 = vset.pattern.permute.xlu1 %v2911_v1  ;;  %2873 = vset.pattern.permute.xlu0 %v2911_v1  ;;  %s2333_s25 = sshll.u32 %s4292_s23, 3  ;;  %s281_s7 = scalar_lea.vmem %s4285_s1, %s4294_s24 }
   0xd   : > { %v2964_v2 = vshrl.u32 %v303_v0, 7  ;;  %s2983_s28 = scalar_lea.vmem %s4287_s3, %s2333_s25  ;;  %s286_s10 = scalar_lea.vmem %s4286_s2, %s4294_s24  ;;  %v301_v19 = vld [vmem:[%s281_s7] sm:$0xf] }
   0xe   : > { %v1456_v13 = vld [vmem:[%s2983_s28 + $0x78] sm:$0xff]  ;;  %v1455_v14 = vld [vmem:[%s2983_s28 + $0x70] sm:$0xff]  ;;  %v302_v20 = vld [vmem:[%s286_s10] sm:$0xf]  ;;  %s2335_s13 = sshll.u32 %s4294_s24, 3 }
   0xf   : > { %v319_v3 = vadd.s32 120, %v2964_v2  ;;  %v2970_v4 = vsub.s32 1, %v2964_v2  ;;  %v350_v5 = vsub.s32 3, %v2964_v2  ;;  %v2974_v6 = vsub.s32 0, %v2964_v2  ;;  %1554 = vperm.xlu0 %2873, %v1456_v13   ;;  %1551 = vperm.xlu1 %2874, %v1455_v14   ;;  %v1488_v23 = vld [vmem:[%s2983_s28 + $0x178] sm:$0xff]  ;;  %v1487_v24 = vld [vmem:[%s2983_s28 + $0x170] sm:$0xff]  ;;  %s298_s16 = scalar_lea.vmem %s4288_s4, %s2335_s13 }
  0x10   : > { %v346_v7 = vsub.s32 2, %v2964_v2  ;;  %v2978_v8 = vadd.s32 112, %v2964_v2  ;;  %v2990_v9 = vadd.s32 104, %v2964_v2  ;;  %v2993_v10 = vadd.s32 96, %v2964_v2  ;;  %v1486_v40 = vld [vmem:[%s2983_s28 + $0x168] sm:$0xff]  ;;  %v1485_v51 = vld [vmem:[%s2983_s28 + $0x160] sm:$0xff] }
  0x11   : > { %v2996_v11 = vadd.s32 88, %v2964_v2  ;;  %v2999_v12 = vadd.s32 80, %v2964_v2  ;;  %v3008_v15 = vadd.s32 72, %v2964_v2  ;;  %v3011_v16 = vadd.s32 64, %v2964_v2  ;;  %v1454_v41 = vld [vmem:[%s2983_s28 + $0x68] sm:$0xff]  ;;  %v1453_v55 = vld [vmem:[%s2983_s28 + $0x60] sm:$0xff] }
  0x12   : > { %v3014_v17 = vadd.s32 56, %v2964_v2  ;;  %v3017_v18 = vadd.s32 48, %v2964_v2  ;;  %v3020_v21 = vadd.s32 40, %v2964_v2  ;;  %v3023_v22 = vadd.s32 32, %v2964_v2  ;;  %v1484_v63 = vld [vmem:[%s2983_s28 + $0x158] sm:$0xff] }
  0x13   : > { %v3028_v25 = vrot.slane %v302_v20, %v2970_v4  ;;  %v3031_v26 = vrot.slane %v301_v19, %v2970_v4  ;;  %v3033_v27 = vrot.slane %v302_v20, %v350_v5  ;;  %v3035_v28 = vrot.slane %v301_v19, %v350_v5  ;;  %1650 = vperm.xlu0 %2873, %v1488_v23   ;;  %v1452_v5 = vld [vmem:[%s2983_s28 + $0x58] sm:$0xff] }
  0x14   : > { %v3038_v29 = vrot.slane %v302_v20, %v2974_v6  ;;  %v3041_v30 = vrot.slane %v301_v19, %v2974_v6  ;;  %v3043_v31 = vrot.slane %v302_v20, %v346_v7  ;;  %v3045_v32 = vrot.slane %v301_v19, %v346_v7  ;;  %1647 = vperm.xlu1 %2874, %v1487_v24  }
  0x15   : > { %vm413_vm0 = vcmp.eq.s32.totalorder %v3028_v25, %v319_v3  ;;  %vm813_vm1 = vcmp.eq.s32.totalorder %v3031_v26, %v319_v3  ;;  %vm415_vm2 = vcmp.eq.s32.totalorder %v3033_v27, %v319_v3  ;;  %vm815_vm3 = vcmp.eq.s32.totalorder %v3035_v28, %v319_v3 }
  0x16   : > { %v2397_v34 = vsel %vm413_vm0, 1.0, %v2912_v33  ;;  %v2525_v35 = vsel %vm813_vm1, 1.0, %v2912_v33  ;;  %v2399_v36 = vsel %vm415_vm2, 1.0, %v2912_v33  ;;  %v2527_v37 = vsel %vm815_vm3, 1.0, %v2912_v33 }
  0x17   : > { %v1197_v38 = vsub.f32 %v2397_v34, %v2525_v35  ;;  %v1199_v39 = vsub.f32 %v2399_v36, %v2527_v37  ;;  %vm412_vm4 = vcmp.eq.s32.totalorder %v3038_v29, %v319_v3  ;;  %vm812_vm5 = vcmp.eq.s32.totalorder %v3041_v30, %v319_v3  ;;  %1548 = vperm.xlu0 %2873, %v1454_v41   ;;  %v1483_v34 = vld [vmem:[%s2983_s28 + $0x150] sm:$0xff] }
  0x18   : > { %v2396_v42 = vsel %vm412_vm4, 1.0, %v2912_v33  ;;  %v2524_v43 = vsel %vm812_vm5, 1.0, %v2912_v33  ;;  %vm414_vm6 = vcmp.eq.s32.totalorder %v3043_v31, %v319_v3  ;;  %vm814_vm7 = vcmp.eq.s32.totalorder %v3045_v32, %v319_v3  ;;  %1644 = vperm.xlu1 %2874, %v1486_v40  }
  0x19   : > { %1275 = vmatprep.subr.mxu0 %v1197_v38  ;;  %1346 = vmatprep.subr.mxu1 %v1199_v39  ;;  %v1196_v44 = vsub.f32 %v2396_v42, %v2524_v43  ;;  %v2398_v45 = vsel %vm414_vm6, 1.0, %v2912_v33  ;;  %v2526_v46 = vsel %vm814_vm7, 1.0, %v2912_v33  ;;  %vm409_vm8 = vcmp.eq.s32.totalorder %v3028_v25, %v2978_v8 }
  0x1a   : > { %v1198_v47 = vsub.f32 %v2398_v45, %v2526_v46  ;;  %v2393_v48 = vsel %vm409_vm8, 1.0, %v2912_v33  ;;  %vm809_vm9 = vcmp.eq.s32.totalorder %v3031_v26, %v2978_v8  ;;  %vm411_vm10 = vcmp.eq.s32.totalorder %v3033_v27, %v2978_v8 }
  0x1b   : > { %1276 = vmatpush1.msra.mxu0 %v1196_v44  ;;  %v2521_v49 = vsel %vm809_vm9, 1.0, %v2912_v33  ;;  %v2395_v50 = vsel %vm411_vm10, 1.0, %v2912_v33  ;;  %vm811_vm11 = vcmp.eq.s32.totalorder %v3035_v28, %v2978_v8  ;;  %vm408_vm12 = vcmp.eq.s32.totalorder %v3038_v29, %v2978_v8  ;;  %1545 = vperm.xlu0 %2873, %v1453_v55   ;;  %v1482_v44 = vld [vmem:[%s2983_s28 + $0x148] sm:$0xff]  ;;  %v1481_v55 = vld [vmem:[%s2983_s28 + $0x140] sm:$0xff] }
  0x1c   : > { %1347 = vmatpush1.msra.mxu1 %v1198_v47  ;;  %v1193_v52 = vsub.f32 %v2393_v48, %v2521_v49  ;;  %v2523_v53 = vsel %vm811_vm11, 1.0, %v2912_v33  ;;  %v2392_v54 = vsel %vm408_vm12, 1.0, %v2912_v33  ;;  %vm808_vm13 = vcmp.eq.s32.totalorder %v3041_v30, %v2978_v8  ;;  %1641 = vperm.xlu1 %2874, %v1485_v51   ;;  %v1450_v48 = vld [vmem:[%s2983_s28 + $0x48] sm:$0xff] }
  0x1d   : > { %v1195_v56 = vsub.f32 %v2395_v50, %v2523_v53  ;;  %v2520_v57 = vsel %vm808_vm13, 1.0, %v2912_v33  ;;  %vm410_vm14 = vcmp.eq.s32.totalorder %v3043_v31, %v2978_v8  ;;  %vm810_vm15 = vcmp.eq.s32.totalorder %v3045_v32, %v2978_v8 }
  0x1e   : > { %1277 = vmatprep.subr.mxu0 %v1193_v52  ;;  %v1192_v58 = vsub.f32 %v2392_v54, %v2520_v57  ;;  %v2394_v59 = vsel %vm410_vm14, 1.0, %v2912_v33  ;;  %v2522_v60 = vsel %vm810_vm15, 1.0, %v2912_v33  ;;  %vm405_vm0 = vcmp.eq.s32.totalorder %v3028_v25, %v2990_v9 }
  0x1f   : > { %1348 = vmatprep.subr.mxu1 %v1195_v56  ;;  %v1194_v61 = vsub.f32 %v2394_v59, %v2522_v60  ;;  %v2389_v62 = vsel %vm405_vm0, 1.0, %v2912_v33  ;;  %vm805_vm1 = vcmp.eq.s32.totalorder %v3031_v26, %v2990_v9  ;;  %vm407_vm2 = vcmp.eq.s32.totalorder %v3033_v27, %v2990_v9  ;;  %1542 = vperm.xlu0 %2873, %v1452_v5  }
  0x20   : > { %1278 = vmatpush1.msra.mxu0 %v1192_v58  ;;  %v2517_v1 = vsel %vm805_vm1, 1.0, %v2912_v33  ;;  %v2391_v3 = vsel %vm407_vm2, 1.0, %v2912_v33  ;;  %vm807_vm3 = vcmp.eq.s32.totalorder %v3035_v28, %v2990_v9  ;;  %vm404_vm4 = vcmp.eq.s32.totalorder %v3038_v29, %v2990_v9  ;;  %1638 = vperm.xlu1 %2874, %v1484_v63   ;;  %v1449_v58 = vld [vmem:[%s2983_s28 + $0x40] sm:$0xff] }
  0x21   : > { %1349 = vmatpush1.msra.mxu1 %v1194_v61  ;;  %v1189_v7 = vsub.f32 %v2389_v62, %v2517_v1  ;;  %v2519_v8 = vsel %vm807_vm3, 1.0, %v2912_v33  ;;  %v2388_v13 = vsel %vm404_vm4, 1.0, %v2912_v33  ;;  %vm804_vm5 = vcmp.eq.s32.totalorder %v3041_v30, %v2990_v9 }
  0x22   : > { %v1191_v14 = vsub.f32 %v2391_v3, %v2519_v8  ;;  %v2516_v19 = vsel %vm804_vm5, 1.0, %v2912_v33  ;;  %vm406_vm6 = vcmp.eq.s32.totalorder %v3043_v31, %v2990_v9  ;;  %vm806_vm7 = vcmp.eq.s32.totalorder %v3045_v32, %v2990_v9  ;;  %v1451_v9 = vld [vmem:[%s2983_s28 + $0x50] sm:$0xff]  ;;  %v1480_v3 = vld [vmem:[%s2983_s28 + $0x138] sm:$0xff] }
  0x23   : > { %1279 = vmatprep.subr.mxu0 %v1189_v7  ;;  %v1188_v20 = vsub.f32 %v2388_v13, %v2516_v19  ;;  %v2390_v23 = vsel %vm406_vm6, 1.0, %v2912_v33  ;;  %v2518_v24 = vsel %vm806_vm7, 1.0, %v2912_v33  ;;  %vm401_vm8 = vcmp.eq.s32.totalorder %v3028_v25, %v2993_v10  ;;  %1539 = vperm.xlu0 %2873, %v1451_v9   ;;  %v1448_v13 = vld [vmem:[%s2983_s28 + $0x38] sm:$0xff] }
  0x24   : > { %1350 = vmatprep.subr.mxu1 %v1191_v14  ;;  %v1190_v35 = vsub.f32 %v2390_v23, %v2518_v24  ;;  %v2385_v36 = vsel %vm401_vm8, 1.0, %v2912_v33  ;;  %vm801_vm9 = vcmp.eq.s32.totalorder %v3031_v26, %v2993_v10  ;;  %vm403_vm10 = vcmp.eq.s32.totalorder %v3033_v27, %v2993_v10  ;;  %1635 = vperm.xlu1 %2874, %v1483_v34  }
  0x25   : > { %1280 = vmatpush1.msra.mxu0 %v1188_v20  ;;  %v2513_v37 = vsel %vm801_vm9, 1.0, %v2912_v33  ;;  %v2387_v38 = vsel %vm403_vm10, 1.0, %v2912_v33  ;;  %vm803_vm11 = vcmp.eq.s32.totalorder %v3035_v28, %v2993_v10  ;;  %vm400_vm12 = vcmp.eq.s32.totalorder %v3038_v29, %v2993_v10 }
  0x26   : > { %1351 = vmatpush1.msra.mxu1 %v1190_v35  ;;  %v1185_v39 = vsub.f32 %v2385_v36, %v2513_v37  ;;  %v2515_v40 = vsel %vm803_vm11, 1.0, %v2912_v33  ;;  %v2384_v41 = vsel %vm400_vm12, 1.0, %v2912_v33  ;;  %vm800_vm13 = vcmp.eq.s32.totalorder %v3041_v30, %v2993_v10  ;;  %v1447_v37 = vld [vmem:[%s2983_s28 + $0x30] sm:$0xff] }
  0x27   : > { %v1187_v42 = vsub.f32 %v2387_v38, %v2515_v40  ;;  %v2512_v43 = vsel %vm800_vm13, 1.0, %v2912_v33  ;;  %vm402_vm14 = vcmp.eq.s32.totalorder %v3043_v31, %v2993_v10  ;;  %vm802_vm15 = vcmp.eq.s32.totalorder %v3045_v32, %v2993_v10  ;;  %1536 = vperm.xlu0 %2873, %v1450_v48  }
  0x28   : > { %1281 = vmatprep.subr.mxu0 %v1185_v39  ;;  %v1184_v45 = vsub.f32 %v2384_v41, %v2512_v43  ;;  %v2386_v46 = vsel %vm402_vm14, 1.0, %v2912_v33  ;;  %v2514_v47 = vsel %vm802_vm15, 1.0, %v2912_v33  ;;  %vm397_vm0 = vcmp.eq.s32.totalorder %v3028_v25, %v2996_v11  ;;  %1632 = vperm.xlu1 %2874, %v1482_v44  }
  0x29   : > { %1352 = vmatprep.subr.mxu1 %v1187_v42  ;;  %v1186_v49 = vsub.f32 %v2386_v46, %v2514_v47  ;;  %v2381_v50 = vsel %vm397_vm0, 1.0, %v2912_v33  ;;  %vm797_vm1 = vcmp.eq.s32.totalorder %v3031_v26, %v2996_v11  ;;  %vm399_vm2 = vcmp.eq.s32.totalorder %v3033_v27, %v2996_v11  ;;  %v1478_v46 = vld [vmem:[%s2983_s28 + $0x128] sm:$0xff] }
  0x2a   : > { %1282 = vmatpush1.msra.mxu0 %v1184_v45  ;;  %v2509_v10 = vsel %vm797_vm1, 1.0, %v2912_v33  ;;  %v2383_v51 = vsel %vm399_vm2, 1.0, %v2912_v33  ;;  %vm799_vm3 = vcmp.eq.s32.totalorder %v3035_v28, %v2996_v11  ;;  %vm396_vm4 = vcmp.eq.s32.totalorder %v3038_v29, %v2996_v11 }
  0x2b   : > { %1353 = vmatpush1.msra.mxu1 %v1186_v49  ;;  %v1181_v52 = vsub.f32 %v2381_v50, %v2509_v10  ;;  %v2511_v53 = vsel %vm799_vm3, 1.0, %v2912_v33  ;;  %v2380_v54 = vsel %vm396_vm4, 1.0, %v2912_v33  ;;  %vm796_vm5 = vcmp.eq.s32.totalorder %v3041_v30, %v2996_v11  ;;  %1533 = vperm.xlu0 %2873, %v1449_v58  }
  0x2c   : > { %v1183_v56 = vsub.f32 %v2383_v51, %v2511_v53  ;;  %v2508_v57 = vsel %vm796_vm5, 1.0, %v2912_v33  ;;  %vm398_vm6 = vcmp.eq.s32.totalorder %v3043_v31, %v2996_v11  ;;  %vm798_vm7 = vcmp.eq.s32.totalorder %v3045_v32, %v2996_v11  ;;  %1629 = vperm.xlu1 %2874, %v1481_v55   ;;  %v1477_v55 = vld [vmem:[%s2983_s28 + $0x120] sm:$0xff] }
  0x2d   : > { %1283 = vmatprep.subr.mxu0 %v1181_v52  ;;  %v1180_v59 = vsub.f32 %v2380_v54, %v2508_v57  ;;  %v2382_v60 = vsel %vm398_vm6, 1.0, %v2912_v33  ;;  %v2510_v61 = vsel %vm798_vm7, 1.0, %v2912_v33  ;;  %vm393_vm8 = vcmp.eq.s32.totalorder %v3028_v25, %v2999_v12 }
  0x2e   : > { %1354 = vmatprep.subr.mxu1 %v1183_v56  ;;  %v1182_v62 = vsub.f32 %v2382_v60, %v2510_v61  ;;  %v2377_v63 = vsel %vm393_vm8, 1.0, %v2912_v33  ;;  %vm793_vm9 = vcmp.eq.s32.totalorder %v3031_v26, %v2999_v12  ;;  %vm395_vm10 = vcmp.eq.s32.totalorder %v3033_v27, %v2999_v12 }
  0x2f   : > { %1284 = vmatpush1.msra.mxu0 %v1180_v59  ;;  %v2505_v11 = vsel %vm793_vm9, 1.0, %v2912_v33  ;;  %v2379_v1 = vsel %vm395_vm10, 1.0, %v2912_v33  ;;  %vm795_vm11 = vcmp.eq.s32.totalorder %v3035_v28, %v2999_v12  ;;  %vm392_vm12 = vcmp.eq.s32.totalorder %v3038_v29, %v2999_v12  ;;  %1530 = vperm.xlu0 %2873, %v1448_v13   ;;  %v1445_v59 = vld [vmem:[%s2983_s28 + $0x20] sm:$0xff] }
  0x30   : > { %1355 = vmatpush1.msra.mxu1 %v1182_v62  ;;  %v1177_v5 = vsub.f32 %v2377_v63, %v2505_v11  ;;  %v2507_v7 = vsel %vm795_vm11, 1.0, %v2912_v33  ;;  %v2376_v8 = vsel %vm392_vm12, 1.0, %v2912_v33  ;;  %vm792_vm13 = vcmp.eq.s32.totalorder %v3041_v30, %v2999_v12  ;;  %1626 = vperm.xlu1 %2874, %v1480_v3   ;;  %v1476_v3 = vld [vmem:[%s2983_s28 + $0x118] sm:$0xff] }
  0x31   : > { %v1179_v14 = vsub.f32 %v2379_v1, %v2507_v7  ;;  %v2504_v19 = vsel %vm792_vm13, 1.0, %v2912_v33  ;;  %vm394_vm14 = vcmp.eq.s32.totalorder %v3043_v31, %v2999_v12  ;;  %vm794_vm15 = vcmp.eq.s32.totalorder %v3045_v32, %v2999_v12  ;;  %v1479_v12 = vld [vmem:[%s2983_s28 + $0x130] sm:$0xff] }
  0x32   : > { %1285 = vmatprep.subr.mxu0 %v1177_v5  ;;  %v1176_v20 = vsub.f32 %v2376_v8, %v2504_v19  ;;  %v2378_v23 = vsel %vm394_vm14, 1.0, %v2912_v33  ;;  %v2506_v24 = vsel %vm794_vm15, 1.0, %v2912_v33  ;;  %vm389_vm0 = vcmp.eq.s32.totalorder %v3028_v25, %v3008_v15  ;;  %v1444_v8 = vld [vmem:[%s2983_s28 + $0x18] sm:$0xff] }
  0x33   : > { %1356 = vmatprep.subr.mxu1 %v1179_v14  ;;  %v1178_v34 = vsub.f32 %v2378_v23, %v2506_v24  ;;  %v2373_v35 = vsel %vm389_vm0, 1.0, %v2912_v33  ;;  %vm789_vm1 = vcmp.eq.s32.totalorder %v3031_v26, %v3008_v15  ;;  %vm391_vm2 = vcmp.eq.s32.totalorder %v3033_v27, %v3008_v15  ;;  %1527 = vperm.xlu0 %2873, %v1447_v37  }
  0x34   : > { %1286 = vmatpush1.msra.mxu0 %v1176_v20  ;;  %v2501_v36 = vsel %vm789_vm1, 1.0, %v2912_v33  ;;  %v2375_v9 = vsel %vm391_vm2, 1.0, %v2912_v33  ;;  %vm791_vm3 = vcmp.eq.s32.totalorder %v3035_v28, %v3008_v15  ;;  %vm388_vm4 = vcmp.eq.s32.totalorder %v3038_v29, %v3008_v15  ;;  %1623 = vperm.xlu1 %2874, %v1479_v12  }
  0x35   : > { %1357 = vmatpush1.msra.mxu1 %v1178_v34  ;;  %v1173_v38 = vsub.f32 %v2373_v35, %v2501_v36  ;;  %v2503_v39 = vsel %vm791_vm3, 1.0, %v2912_v33  ;;  %v2372_v40 = vsel %vm388_vm4, 1.0, %v2912_v33  ;;  %vm788_vm5 = vcmp.eq.s32.totalorder %v3041_v30, %v3008_v15  ;;  %v1475_v34 = vld [vmem:[%s2983_s28 + $0x110] sm:$0xff] }
  0x36   : > { %v1175_v41 = vsub.f32 %v2375_v9, %v2503_v39  ;;  %v2500_v42 = vsel %vm788_vm5, 1.0, %v2912_v33  ;;  %vm390_vm6 = vcmp.eq.s32.totalorder %v3043_v31, %v3008_v15  ;;  %vm790_vm7 = vcmp.eq.s32.totalorder %v3045_v32, %v3008_v15  ;;  %v1446_v15 = vld [vmem:[%s2983_s28 + $0x28] sm:$0xff]  ;;  %v1443_v9 = vld [vmem:[%s2983_s28 + $0x10] sm:$0xff] }
  0x37   : > { %1287 = vmatprep.subr.mxu0 %v1173_v38  ;;  %v1172_v43 = vsub.f32 %v2372_v40, %v2500_v42  ;;  %v2374_v44 = vsel %vm390_vm6, 1.0, %v2912_v33  ;;  %v2502_v45 = vsel %vm790_vm7, 1.0, %v2912_v33  ;;  %vm385_vm8 = vcmp.eq.s32.totalorder %v3028_v25, %v3011_v16  ;;  %1524 = vperm.xlu0 %2873, %v1446_v15  }
  0x38   : > { %1358 = vmatprep.subr.mxu1 %v1175_v41  ;;  %v1174_v47 = vsub.f32 %v2374_v44, %v2502_v45  ;;  %v2369_v48 = vsel %vm385_vm8, 1.0, %v2912_v33  ;;  %vm785_vm9 = vcmp.eq.s32.totalorder %v3031_v26, %v3011_v16  ;;  %vm387_vm10 = vcmp.eq.s32.totalorder %v3033_v27, %v3011_v16  ;;  %1620 = vperm.xlu1 %2874, %v1478_v46   ;;  %v1442_v46 = vld [vmem:[%s2983_s28 + $0x8] sm:$0xff] }
  0x39   : > { %1288 = vmatpush1.msra.mxu0 %v1172_v43  ;;  %v2497_v49 = vsel %vm785_vm9, 1.0, %v2912_v33  ;;  %v2371_v50 = vsel %vm387_vm10, 1.0, %v2912_v33  ;;  %vm787_vm11 = vcmp.eq.s32.totalorder %v3035_v28, %v3011_v16  ;;  %vm384_vm12 = vcmp.eq.s32.totalorder %v3038_v29, %v3011_v16 }
  0x3a   : > { %1359 = vmatpush1.msra.mxu1 %v1174_v47  ;;  %v1169_v10 = vsub.f32 %v2369_v48, %v2497_v49  ;;  %v2499_v51 = vsel %vm787_vm11, 1.0, %v2912_v33  ;;  %v2368_v52 = vsel %vm384_vm12, 1.0, %v2912_v33  ;;  %vm784_vm13 = vcmp.eq.s32.totalorder %v3041_v30, %v3011_v16 }
  0x3b   : > { %v1171_v53 = vsub.f32 %v2371_v50, %v2499_v51  ;;  %v2496_v54 = vsel %vm784_vm13, 1.0, %v2912_v33  ;;  %vm386_vm14 = vcmp.eq.s32.totalorder %v3043_v31, %v3011_v16  ;;  %vm786_vm15 = vcmp.eq.s32.totalorder %v3045_v32, %v3011_v16  ;;  %1521 = vperm.xlu0 %2873, %v1445_v59  }
  0x3c   : > { %1289 = vmatprep.subr.mxu0 %v1169_v10  ;;  %v1168_v56 = vsub.f32 %v2368_v52, %v2496_v54  ;;  %v2370_v57 = vsel %vm386_vm14, 1.0, %v2912_v33  ;;  %v2498_v58 = vsel %vm786_vm15, 1.0, %v2912_v33  ;;  %vm381_vm0 = vcmp.eq.s32.totalorder %v3028_v25, %v3014_v17  ;;  %1617 = vperm.xlu1 %2874, %v1477_v55  }
  0x3d   : > { %1360 = vmatprep.subr.mxu1 %v1171_v53  ;;  %v1170_v60 = vsub.f32 %v2370_v57, %v2498_v58  ;;  %v2365_v61 = vsel %vm381_vm0, 1.0, %v2912_v33  ;;  %vm781_vm1 = vcmp.eq.s32.totalorder %v3031_v26, %v3014_v17  ;;  %vm383_vm2 = vcmp.eq.s32.totalorder %v3033_v27, %v3014_v17  ;;  %v1473_v53 = vld [vmem:[%s2983_s28 + $0x100] sm:$0xff] }
  0x3e   : > { %1290 = vmatpush1.msra.mxu0 %v1168_v56  ;;  %v2493_v16 = vsel %vm781_vm1, 1.0, %v2912_v33  ;;  %v2367_v62 = vsel %vm383_vm2, 1.0, %v2912_v33  ;;  %vm783_vm3 = vcmp.eq.s32.totalorder %v3035_v28, %v3014_v17  ;;  %vm380_vm4 = vcmp.eq.s32.totalorder %v3038_v29, %v3014_v17 }
  0x3f   : > { %1361 = vmatpush1.msra.mxu1 %v1170_v60  ;;  %v1165_v63 = vsub.f32 %v2365_v61, %v2493_v16  ;;  %v2495_v11 = vsel %vm783_vm3, 1.0, %v2912_v33  ;;  %v2364_v1 = vsel %vm380_vm4, 1.0, %v2912_v33  ;;  %vm780_vm5 = vcmp.eq.s32.totalorder %v3041_v30, %v3014_v17  ;;  %1518 = vperm.xlu0 %2873, %v1444_v8  }
  0x40   : > { %v1167_v5 = vsub.f32 %v2367_v62, %v2495_v11  ;;  %v2492_v7 = vsel %vm780_vm5, 1.0, %v2912_v33  ;;  %vm382_vm6 = vcmp.eq.s32.totalorder %v3043_v31, %v3014_v17  ;;  %vm782_vm7 = vcmp.eq.s32.totalorder %v3045_v32, %v3014_v17  ;;  %1614 = vperm.xlu1 %2874, %v1476_v3   ;;  %v1504_v3 = vld [vmem:[%s2983_s28 + $0x1f8] sm:$0xff] }
  0x41   : > { %1291 = vmatprep.subr.mxu0 %v1165_v63  ;;  %v1164_v13 = vsub.f32 %v2364_v1, %v2492_v7  ;;  %v2366_v14 = vsel %vm382_vm6, 1.0, %v2912_v33  ;;  %v2494_v19 = vsel %vm782_vm7, 1.0, %v2912_v33  ;;  %vm377_vm8 = vcmp.eq.s32.totalorder %v3028_v25, %v3017_v18 }
  0x42   : > { %1362 = vmatprep.subr.mxu1 %v1167_v5  ;;  %v1166_v20 = vsub.f32 %v2366_v14, %v2494_v19  ;;  %v2361_v23 = vsel %vm377_vm8, 1.0, %v2912_v33  ;;  %vm777_vm9 = vcmp.eq.s32.totalorder %v3031_v26, %v3017_v18  ;;  %vm379_vm10 = vcmp.eq.s32.totalorder %v3033_v27, %v3017_v18 }
  0x43   : > { %1292 = vmatpush1.msra.mxu0 %v1164_v13  ;;  %v2489_v17 = vsel %vm777_vm9, 1.0, %v2912_v33  ;;  %v2363_v24 = vsel %vm379_vm10, 1.0, %v2912_v33  ;;  %vm779_vm11 = vcmp.eq.s32.totalorder %v3035_v28, %v3017_v18  ;;  %vm376_vm12 = vcmp.eq.s32.totalorder %v3038_v29, %v3017_v18  ;;  %1515 = vperm.xlu0 %2873, %v1443_v9  }
  0x44   : > { %1363 = vmatpush1.msra.mxu1 %v1166_v20  ;;  %v1161_v35 = vsub.f32 %v2361_v23, %v2489_v17  ;;  %v2491_v12 = vsel %vm779_vm11, 1.0, %v2912_v33  ;;  %v2360_v36 = vsel %vm376_vm12, 1.0, %v2912_v33  ;;  %vm776_vm13 = vcmp.eq.s32.totalorder %v3041_v30, %v3017_v18  ;;  %1611 = vperm.xlu1 %2874, %v1475_v34  }
  0x45   : > { %v1163_v37 = vsub.f32 %v2363_v24, %v2491_v12  ;;  %v2488_v38 = vsel %vm776_vm13, 1.0, %v2912_v33  ;;  %vm378_vm14 = vcmp.eq.s32.totalorder %v3043_v31, %v3017_v18  ;;  %vm778_vm15 = vcmp.eq.s32.totalorder %v3045_v32, %v3017_v18  ;;  %v1474_v18 = vld [vmem:[%s2983_s28 + $0x108] sm:$0xff]  ;;  %v1503_v24 = vld [vmem:[%s2983_s28 + $0x1f0] sm:$0xff] }
  0x46   : > { %1293 = vmatprep.subr.mxu0 %v1161_v35  ;;  %v1160_v39 = vsub.f32 %v2360_v36, %v2488_v38  ;;  %v2362_v40 = vsel %vm378_vm14, 1.0, %v2912_v33  ;;  %v2490_v41 = vsel %vm778_vm15, 1.0, %v2912_v33  ;;  %vm373_vm0 = vcmp.eq.s32.totalorder %v3028_v25, %v3020_v21  ;;  %v1471_v12 = vld [vmem:[%s2983_s28 + $0xf0] sm:$0xff] }
  0x47   : > { %1364 = vmatprep.subr.mxu1 %v1163_v37  ;;  %v1162_v42 = vsub.f32 %v2362_v40, %v2490_v41  ;;  %v2357_v43 = vsel %vm373_vm0, 1.0, %v2912_v33  ;;  %vm773_vm1 = vcmp.eq.s32.totalorder %v3031_v26, %v3020_v21  ;;  %vm375_vm2 = vcmp.eq.s32.totalorder %v3033_v27, %v3020_v21  ;;  %1512 = vperm.xlu0 %2873, %v1442_v46  }
  0x48   : > { %1294 = vmatpush1.msra.mxu0 %v1160_v39  ;;  %v2485_v44 = vsel %vm773_vm1, 1.0, %v2912_v33  ;;  %v2359_v45 = vsel %vm375_vm2, 1.0, %v2912_v33  ;;  %vm775_vm3 = vcmp.eq.s32.totalorder %v3035_v28, %v3020_v21  ;;  %vm372_vm4 = vcmp.eq.s32.totalorder %v3038_v29, %v3020_v21  ;;  %1608 = vperm.xlu1 %2874, %v1474_v18  }
  0x49   : > { %1365 = vmatpush1.msra.mxu1 %v1162_v42  ;;  %v1157_v47 = vsub.f32 %v2357_v43, %v2485_v44  ;;  %v2487_v48 = vsel %vm775_vm3, 1.0, %v2912_v33  ;;  %v2356_v15 = vsel %vm372_vm4, 1.0, %v2912_v33  ;;  %vm772_vm5 = vcmp.eq.s32.totalorder %v3041_v30, %v3020_v21  ;;  %v1502_v42 = vld [vmem:[%s2983_s28 + $0x1e8] sm:$0xff] }
  0x4a   : > { %v1159_v49 = vsub.f32 %v2359_v45, %v2487_v48  ;;  %v2484_v50 = vsel %vm772_vm5, 1.0, %v2912_v33  ;;  %vm374_vm6 = vcmp.eq.s32.totalorder %v3043_v31, %v3020_v21  ;;  %vm774_vm7 = vcmp.eq.s32.totalorder %v3045_v32, %v3020_v21  ;;  %v1441_v21 = vld [vmem:[%s2983_s28] sm:$0xff]  ;;  %v1470_v45 = vld [vmem:[%s2983_s28 + $0xe8] sm:$0xff] }
  0x4b   : > { %1295 = vmatprep.subr.mxu0 %v1157_v47  ;;  %v1156_v10 = vsub.f32 %v2356_v15, %v2484_v50  ;;  %v2358_v51 = vsel %vm374_vm6, 1.0, %v2912_v33  ;;  %v2486_v52 = vsel %vm774_vm7, 1.0, %v2912_v33  ;;  %vm369_vm8 = vcmp.eq.s32.totalorder %v3028_v25, %v3023_v22  ;;  %1509 = vperm.xlu0 %2873, %v1441_v21  }
  0x4c   : > { %1366 = vmatprep.subr.mxu1 %v1159_v49  ;;  %v1158_v54 = vsub.f32 %v2358_v51, %v2486_v52  ;;  %v2353_v55 = vsel %vm369_vm8, 1.0, %v2912_v33  ;;  %vm769_vm9 = vcmp.eq.s32.totalorder %v3031_v26, %v3023_v22  ;;  %vm371_vm10 = vcmp.eq.s32.totalorder %v3033_v27, %v3023_v22  ;;  %1605 = vperm.xlu1 %2874, %v1473_v53   ;;  %v1501_v51 = vld [vmem:[%s2983_s28 + $0x1e0] sm:$0xff] }
  0x4d   : > { %1296 = vmatpush1.msra.mxu0 %v1156_v10  ;;  %v2481_v56 = vsel %vm769_vm9, 1.0, %v2912_v33  ;;  %v2355_v57 = vsel %vm371_vm10, 1.0, %v2912_v33  ;;  %vm771_vm11 = vcmp.eq.s32.totalorder %v3035_v28, %v3023_v22  ;;  %vm368_vm12 = vcmp.eq.s32.totalorder %v3038_v29, %v3023_v22 }
  0x4e   : > { %1367 = vmatpush1.msra.mxu1 %v1158_v54  ;;  %v1153_v58 = vsub.f32 %v2353_v55, %v2481_v56  ;;  %v2483_v59 = vsel %vm771_vm11, 1.0, %v2912_v33  ;;  %v2352_v60 = vsel %vm368_vm12, 1.0, %v2912_v33  ;;  %vm768_vm13 = vcmp.eq.s32.totalorder %v3041_v30, %v3023_v22  ;;  %v1469_v54 = vld [vmem:[%s2983_s28 + $0xe0] sm:$0xff] }
  0x4f   : > { %v1155_v61 = vsub.f32 %v2355_v57, %v2483_v59  ;;  %v2480_v16 = vsel %vm768_vm13, 1.0, %v2912_v33  ;;  %vm370_vm14 = vcmp.eq.s32.totalorder %v3043_v31, %v3023_v22  ;;  %vm770_vm15 = vcmp.eq.s32.totalorder %v3045_v32, %v3023_v22  ;;  %v1472_v22 = vld [vmem:[%s2983_s28 + $0xf8] sm:$0xff] }
  0x50   : > { %1297 = vmatprep.subr.mxu0 %v1153_v58  ;;  %v1152_v62 = vsub.f32 %v2352_v60, %v2480_v16  ;;  %v2354_v63 = vsel %vm370_vm14, 1.0, %v2912_v33  ;;  %v2482_v11 = vsel %vm770_vm15, 1.0, %v2912_v33  ;;  %v307_v1 = vadd.s32 24, %v2964_v2  ;;  %1698 = vperm.xlu1 %2874, %v1504_v3  }
  0x51   : > { %v3358_v5 = vand.u32 127, %v303_v0  ;;  %1368 = vmatprep.subr.mxu1 %v1155_v61  ;;  %v1154_v7 = vsub.f32 %v2354_v63, %v2482_v11  ;;  %v306_v8 = vadd.s32 16, %v2964_v2  ;;  %v3362_v13 = vadd.s32 8, %v2964_v2  ;;  %1602 = vperm.xlu0 %2873, %v1472_v22   ;;  %v1468_v11 = vld [vmem:[%s2983_s28 + $0xd8] sm:$0xff] }
  0x52   : > { %1298 = vmatpush1.msra.mxu0 %v1152_v62  ;;  %vm365_vm0 = vcmp.eq.s32.totalorder %v3028_v25, %v307_v1  ;;  %vm765_vm1 = vcmp.eq.s32.totalorder %v3031_v26, %v307_v1  ;;  %vm367_vm2 = vcmp.eq.s32.totalorder %v3033_v27, %v307_v1  ;;  %vm767_vm3 = vcmp.eq.s32.totalorder %v3035_v28, %v307_v1  ;;  %v1500_v62 = vld [vmem:[%s2983_s28 + $0x1d8] sm:$0xff] }
  0x53   : > { %1369 = vmatpush1.msra.mxu1 %v1154_v7  ;;  %v2349_v0 = vsel %vm365_vm0, 1.0, %v2912_v33  ;;  %v2477_v14 = vsel %vm765_vm1, 1.0, %v2912_v33  ;;  %v2351_v19 = vsel %vm367_vm2, 1.0, %v2912_v33  ;;  %v2479_v20 = vsel %vm767_vm3, 1.0, %v2912_v33 }
  0x54   : > { %v1149_v23 = vsub.f32 %v2349_v0, %v2477_v14  ;;  %v1151_v17 = vsub.f32 %v2351_v19, %v2479_v20  ;;  %vm364_vm4 = vcmp.eq.s32.totalorder %v3038_v29, %v307_v1  ;;  %vm764_vm5 = vcmp.eq.s32.totalorder %v3041_v30, %v307_v1  ;;  %1695 = vperm.xlu1 %2874, %v1503_v24   ;;  %v1499_v19 = vld [vmem:[%s2983_s28 + $0x1d0] sm:$0xff] }
  0x55   : > { %v2348_v34 = vsel %vm364_vm4, 1.0, %v2912_v33  ;;  %v2476_v35 = vsel %vm764_vm5, 1.0, %v2912_v33  ;;  %vm366_vm6 = vcmp.eq.s32.totalorder %v3043_v31, %v307_v1  ;;  %vm766_vm7 = vcmp.eq.s32.totalorder %v3045_v32, %v307_v1  ;;  %1599 = vperm.xlu0 %2873, %v1471_v12  }
  0x56   : > { %vm353_vm8 = vcmp.eq.s32.totalorder %v3028_v25, %v2964_v2  ;;  %1299 = vmatprep.subr.mxu0 %v1149_v23  ;;  %1370 = vmatprep.subr.mxu1 %v1151_v17  ;;  %v1148_v36 = vsub.f32 %v2348_v34, %v2476_v35  ;;  %v2350_v9 = vsel %vm366_vm6, 1.0, %v2912_v33  ;;  %v2478_v37 = vsel %vm766_vm7, 1.0, %v2912_v33  ;;  %v1467_v34 = vld [vmem:[%s2983_s28 + $0xd0] sm:$0xff] }
  0x57   : > { %vm361_vm9 = vcmp.eq.s32.totalorder %v3028_v25, %v306_v8  ;;  %v1150_v38 = vsub.f32 %v2350_v9, %v2478_v37  ;;  %vm761_vm10 = vcmp.eq.s32.totalorder %v3031_v26, %v306_v8  ;;  %vm363_vm11 = vcmp.eq.s32.totalorder %v3033_v27, %v306_v8 }
  0x58   : > { %v2345_v39 = vsel %vm361_vm9, 1.0, %v2912_v33  ;;  %1300 = vmatpush1.msra.mxu0 %v1148_v36  ;;  %v2473_v40 = vsel %vm761_vm10, 1.0, %v2912_v33  ;;  %v2347_v41 = vsel %vm363_vm11, 1.0, %v2912_v33  ;;  %vm763_vm12 = vcmp.eq.s32.totalorder %v3035_v28, %v306_v8  ;;  %1692 = vperm.xlu1 %2874, %v1502_v42  }
  0x59   : > { %vm360_vm13 = vcmp.eq.s32.totalorder %v3038_v29, %v306_v8  ;;  %1371 = vmatpush1.msra.mxu1 %v1150_v38  ;;  %v1145_v43 = vsub.f32 %v2345_v39, %v2473_v40  ;;  %v2475_v18 = vsel %vm763_vm12, 1.0, %v2912_v33  ;;  %vm760_vm14 = vcmp.eq.s32.totalorder %v3041_v30, %v306_v8  ;;  %1596 = vperm.xlu0 %2873, %v1470_v45   ;;  %v1498_v39 = vld [vmem:[%s2983_s28 + $0x1c8] sm:$0xff] }
  0x5a   : > { %v2344_v44 = vsel %vm360_vm13, 1.0, %v2912_v33  ;;  %v1147_v46 = vsub.f32 %v2347_v41, %v2475_v18  ;;  %v2472_v47 = vsel %vm760_vm14, 1.0, %v2912_v33  ;;  %vm362_vm15 = vcmp.eq.s32.totalorder %v3043_v31, %v306_v8 }
  0x5b   : > { %vm762_vm0 = vcmp.eq.s32.totalorder %v3045_v32, %v306_v8  ;;  %1301 = vmatprep.subr.mxu0 %v1145_v43  ;;  %v1144_v48 = vsub.f32 %v2344_v44, %v2472_v47  ;;  %v2346_v15 = vsel %vm362_vm15, 1.0, %v2912_v33  ;;  %vm357_vm1 = vcmp.eq.s32.totalorder %v3028_v25, %v3362_v13  ;;  %v1466_v43 = vld [vmem:[%s2983_s28 + $0xc8] sm:$0xff] }
  0x5c   : > { %v2474_v49 = vsel %vm762_vm0, 1.0, %v2912_v33  ;;  %1372 = vmatprep.subr.mxu1 %v1147_v46  ;;  %v2341_v10 = vsel %vm357_vm1, 1.0, %v2912_v33  ;;  %vm757_vm2 = vcmp.eq.s32.totalorder %v3031_v26, %v3362_v13  ;;  %vm359_vm3 = vcmp.eq.s32.totalorder %v3033_v27, %v3362_v13  ;;  %1689 = vperm.xlu1 %2874, %v1501_v51   ;;  %v1465_v51 = vld [vmem:[%s2983_s28 + $0xc0] sm:$0xff] }
  0x5d   : > { %v1146_v50 = vsub.f32 %v2346_v15, %v2474_v49  ;;  %1302 = vmatpush1.msra.mxu0 %v1144_v48  ;;  %v2469_v52 = vsel %vm757_vm2, 1.0, %v2912_v33  ;;  %v2343_v53 = vsel %vm359_vm3, 1.0, %v2912_v33  ;;  %vm759_vm4 = vcmp.eq.s32.totalorder %v3035_v28, %v3362_v13  ;;  %1593 = vperm.xlu0 %2873, %v1469_v54   ;;  %v1497_v49 = vld [vmem:[%s2983_s28 + $0x1c0] sm:$0xff] }
  0x5e   : > { %vm356_vm5 = vcmp.eq.s32.totalorder %v3038_v29, %v3362_v13  ;;  %v1141_v55 = vsub.f32 %v2341_v10, %v2469_v52  ;;  %v2471_v21 = vsel %vm759_vm4, 1.0, %v2912_v33  ;;  %vm756_vm6 = vcmp.eq.s32.totalorder %v3041_v30, %v3362_v13 }
  0x5f   : > { %1373 = vmatpush1.msra.mxu1 %v1146_v50  ;;  %v2340_v56 = vsel %vm356_vm5, 1.0, %v2912_v33  ;;  %v1143_v57 = vsub.f32 %v2343_v53, %v2471_v21  ;;  %v2468_v58 = vsel %vm756_vm6, 1.0, %v2912_v33  ;;  %vm358_vm7 = vcmp.eq.s32.totalorder %v3043_v31, %v3362_v13 }
  0x60   : > { %vm758_vm9 = vcmp.eq.s32.totalorder %v3045_v32, %v3362_v13  ;;  %1303 = vmatprep.subr.mxu0 %v1141_v55  ;;  %v1140_v59 = vsub.f32 %v2340_v56, %v2468_v58  ;;  %v2342_v60 = vsel %vm358_vm7, 1.0, %v2912_v33  ;;  %v2337_v16 = vsel %vm353_vm8, 1.0, %v2912_v33  ;;  %1686 = vperm.xlu1 %2874, %v1500_v62   ;;  %v1464_v62 = vld [vmem:[%s2983_s28 + $0xb8] sm:$0xff] }
  0x61   : > { %v2470_v61 = vsel %vm758_vm9, 1.0, %v2912_v33  ;;  %1374 = vmatprep.subr.mxu1 %v1143_v57  ;;  %vm753_vm10 = vcmp.eq.s32.totalorder %v3031_v26, %v2964_v2  ;;  %vm355_vm11 = vcmp.eq.s32.totalorder %v3033_v27, %v2964_v2  ;;  %vm755_vm12 = vcmp.eq.s32.totalorder %v3035_v28, %v2964_v2  ;;  %1590 = vperm.xlu0 %2873, %v1468_v11  }
  0x62   : > { %v1142_v63 = vsub.f32 %v2342_v60, %v2470_v61  ;;  %1304 = vmatpush1.msra.mxu0 %v1140_v59  ;;  %v2465_v1 = vsel %vm753_vm10, 1.0, %v2912_v33  ;;  %v2339_v3 = vsel %vm355_vm11, 1.0, %v2912_v33  ;;  %v2467_v7 = vsel %vm755_vm12, 1.0, %v2912_v33  ;;  %v1496_v61 = vld [vmem:[%s2983_s28 + $0x1b8] sm:$0xff] }
  0x63   : > { %vm352_vm8 = vcmp.eq.s32.totalorder %v3038_v29, %v2964_v2  ;;  %v1137_v8 = vsub.f32 %v2337_v16, %v2465_v1  ;;  %v1139_v13 = vsub.f32 %v2339_v3, %v2467_v7  ;;  %vm752_vm13 = vcmp.eq.s32.totalorder %v3041_v30, %v2964_v2 }
  0x64   : > { %1375 = vmatpush1.msra.mxu1 %v1142_v63  ;;  %v2336_v22 = vsel %vm352_vm8, 1.0, %v2912_v33  ;;  %v2464_v0 = vsel %vm752_vm13, 1.0, %v2912_v33  ;;  %vm354_vm14 = vcmp.eq.s32.totalorder %v3043_v31, %v2964_v2  ;;  %vm754_vm15 = vcmp.eq.s32.totalorder %v3045_v32, %v2964_v2  ;;  %1683 = vperm.xlu1 %2874, %v1499_v19  }
  0x65   : > { %v335_v14 = vadd.s32 248, %v2964_v2  ;;  %1305 = vmatprep.subr.mxu0 %v1137_v8  ;;  %1376 = vmatprep.subr.mxu1 %v1139_v13  ;;  %v1136_v20 = vsub.f32 %v2336_v22, %v2464_v0  ;;  %v2338_v23 = vsel %vm354_vm14, 1.0, %v2912_v33  ;;  %v2466_v17 = vsel %vm754_vm15, 1.0, %v2912_v33  ;;  %v1495_v0 = vld [vmem:[%s2983_s28 + $0x1b0] sm:$0xff] }
  0x66   : > { %v334_v24 = vadd.s32 240, %v2964_v2  ;;  %v1138_v35 = vsub.f32 %v2338_v23, %v2466_v17  ;;  %1587 = vperm.xlu0 %2873, %v1467_v34   ;;  %v333_v56 = vadd.s32 232, %v2964_v2  ;;  %v3498_v58 = vadd.s32 224, %v2964_v2 }
  0x67   : > { %vm477_vm0 = vcmp.eq.s32.totalorder %v3028_v25, %v335_v14  ;;  %vm877_vm1 = vcmp.eq.s32.totalorder %v3031_v26, %v335_v14  ;;  %vm479_vm2 = vcmp.eq.s32.totalorder %v3033_v27, %v335_v14  ;;  %1306 = vmatpush1.msra.mxu0 %v1136_v20  ;;  %vm879_vm3 = vcmp.eq.s32.totalorder %v3035_v28, %v335_v14  ;;  %v1463_v20 = vld [vmem:[%s2983_s28 + $0xb0] sm:$0xff] }
  0x68   : > { %v2461_v12 = vsel %vm477_vm0, 1.0, %v2912_v33  ;;  %v2589_v36 = vsel %vm877_vm1, 1.0, %v2912_v33  ;;  %v2463_v9 = vsel %vm479_vm2, 1.0, %v2912_v33  ;;  %1377 = vmatpush1.msra.mxu1 %v1138_v35  ;;  %v2591_v38 = vsel %vm879_vm3, 1.0, %v2912_v33  ;;  %1680 = vperm.xlu1 %2874, %v1498_v39  }
  0x69   : > { %v1261_v37 = vsub.f32 %v2461_v12, %v2589_v36  ;;  %vm476_vm4 = vcmp.eq.s32.totalorder %v3038_v29, %v335_v14  ;;  %vm876_vm5 = vcmp.eq.s32.totalorder %v3041_v30, %v335_v14  ;;  %v1263_v40 = vsub.f32 %v2463_v9, %v2591_v38  ;;  %v1494_v9 = vld [vmem:[%s2983_s28 + $0x1a8] sm:$0xff] }
  0x6a   : > { %v2460_v41 = vsel %vm476_vm4, 1.0, %v2912_v33  ;;  %v2588_v42 = vsel %vm876_vm5, 1.0, %v2912_v33  ;;  %vm478_vm6 = vcmp.eq.s32.totalorder %v3043_v31, %v335_v14  ;;  %vm878_vm7 = vcmp.eq.s32.totalorder %v3045_v32, %v335_v14  ;;  %1584 = vperm.xlu0 %2873, %v1466_v43  }
  0x6b   : > { %1307 = vmatprep.subr.mxu0 %v1261_v37  ;;  %v1260_v18 = vsub.f32 %v2460_v41, %v2588_v42  ;;  %v2462_v44 = vsel %vm478_vm6, 1.0, %v2912_v33  ;;  %vm473_vm9 = vcmp.eq.s32.totalorder %v3028_v25, %v334_v24  ;;  %1378 = vmatprep.subr.mxu1 %v1263_v40  ;;  %v2590_v45 = vsel %vm878_vm7, 1.0, %v2912_v33  ;;  %v1462_v40 = vld [vmem:[%s2983_s28 + $0xa8] sm:$0xff] }
  0x6c   : > { %v2457_v46 = vsel %vm473_vm9, 1.0, %v2912_v33  ;;  %vm873_vm10 = vcmp.eq.s32.totalorder %v3031_v26, %v334_v24  ;;  %vm475_vm11 = vcmp.eq.s32.totalorder %v3033_v27, %v334_v24  ;;  %v1262_v47 = vsub.f32 %v2462_v44, %v2590_v45  ;;  %1677 = vperm.xlu1 %2874, %v1497_v49   ;;  %v1461_v49 = vld [vmem:[%s2983_s28 + $0xa0] sm:$0xff] }
  0x6d   : > { %1308 = vmatpush2.msra.mxu0 %v1260_v18  ;;  %v2585_v48 = vsel %vm873_vm10, 1.0, %v2912_v33  ;;  %v2459_v15 = vsel %vm475_vm11, 1.0, %v2912_v33  ;;  %vm875_vm12 = vcmp.eq.s32.totalorder %v3035_v28, %v334_v24  ;;  %vm472_vm8 = vcmp.eq.s32.totalorder %v3038_v29, %v334_v24 }
  0x6e   : > { %v1257_v50 = vsub.f32 %v2457_v46, %v2585_v48  ;;  %v2587_v10 = vsel %vm875_vm12, 1.0, %v2912_v33  ;;  %vm872_vm13 = vcmp.eq.s32.totalorder %v3041_v30, %v334_v24  ;;  %1379 = vmatpush2.msra.mxu1 %v1262_v47  ;;  %v2456_v53 = vsel %vm472_vm8, 1.0, %v2912_v33  ;;  %1581 = vperm.xlu0 %2873, %v1465_v51   ;;  %v1493_v47 = vld [vmem:[%s2983_s28 + $0x1a0] sm:$0xff] }
  0x6f   : > { %v1259_v52 = vsub.f32 %v2459_v15, %v2587_v10  ;;  %v2584_v54 = vsel %vm872_vm13, 1.0, %v2912_v33  ;;  %vm474_vm14 = vcmp.eq.s32.totalorder %v3043_v31, %v334_v24  ;;  %vm874_vm15 = vcmp.eq.s32.totalorder %v3045_v32, %v334_v24 }
  0x70   : > { %1309 = vmatprep.subr.mxu0 %v1257_v50  ;;  %v1256_v55 = vsub.f32 %v2456_v53, %v2584_v54  ;;  %v2458_v21 = vsel %vm474_vm14, 1.0, %v2912_v33  ;;  %v2586_v57 = vsel %vm874_vm15, 1.0, %v2912_v33  ;;  %v3501_v59 = vadd.s32 216, %v2964_v2  ;;  %1674 = vperm.xlu1 %2874, %v1496_v61  }
  0x71   : > { %1380 = vmatprep.subr.mxu1 %v1259_v52  ;;  %v3504_v60 = vadd.s32 208, %v2964_v2  ;;  %v1258_v16 = vsub.f32 %v2458_v21, %v2586_v57  ;;  %vm469_vm0 = vcmp.eq.s32.totalorder %v3028_v25, %v333_v56  ;;  %vm869_vm1 = vcmp.eq.s32.totalorder %v3031_v26, %v333_v56  ;;  %v1492_v21 = vld [vmem:[%s2983_s28 + $0x198] sm:$0xff] }
  0x72   : > { %1310 = vmatpush2.msra.mxu0 %v1256_v55  ;;  %vm471_vm2 = vcmp.eq.s32.totalorder %v3033_v27, %v333_v56  ;;  %v2453_v63 = vsel %vm469_vm0, 1.0, %v2912_v33  ;;  %v2581_v11 = vsel %vm869_vm1, 1.0, %v2912_v33  ;;  %vm871_vm3 = vcmp.eq.s32.totalorder %v3035_v28, %v333_v56  ;;  %1578 = vperm.xlu0 %2873, %v1464_v62  }
  0x73   : > { %v2455_v1 = vsel %vm471_vm2, 1.0, %v2912_v33  ;;  %1381 = vmatpush2.msra.mxu1 %v1258_v16  ;;  %v1253_v3 = vsub.f32 %v2453_v63, %v2581_v11  ;;  %v2583_v7 = vsel %vm871_vm3, 1.0, %v2912_v33  ;;  %vm468_vm4 = vcmp.eq.s32.totalorder %v3038_v29, %v333_v56 }
  0x74   : > { %vm868_vm5 = vcmp.eq.s32.totalorder %v3041_v30, %v333_v56  ;;  %v1255_v8 = vsub.f32 %v2455_v1, %v2583_v7  ;;  %v2452_v13 = vsel %vm468_vm4, 1.0, %v2912_v33  ;;  %vm470_vm6 = vcmp.eq.s32.totalorder %v3043_v31, %v333_v56  ;;  %1671 = vperm.xlu1 %2874, %v1495_v0  }
  0x75   : > { %v2580_v22 = vsel %vm868_vm5, 1.0, %v2912_v33  ;;  %1311 = vmatprep.subr.mxu0 %v1253_v3  ;;  %v2454_v19 = vsel %vm470_vm6, 1.0, %v2912_v33  ;;  %vm870_vm7 = vcmp.eq.s32.totalorder %v3045_v32, %v333_v56  ;;  %vm465_vm9 = vcmp.eq.s32.totalorder %v3028_v25, %v3498_v58 }
  0x76   : > { %v1252_v14 = vsub.f32 %v2452_v13, %v2580_v22  ;;  %1382 = vmatprep.subr.mxu1 %v1255_v8  ;;  %v2582_v23 = vsel %vm870_vm7, 1.0, %v2912_v33  ;;  %v2449_v17 = vsel %vm465_vm9, 1.0, %v2912_v33  ;;  %vm865_vm10 = vcmp.eq.s32.totalorder %v3031_v26, %v3498_v58  ;;  %1575 = vperm.xlu0 %2873, %v1463_v20   ;;  %v1491_v8 = vld [vmem:[%s2983_s28 + $0x190] sm:$0xff] }
  0x77   : > { %vm467_vm11 = vcmp.eq.s32.totalorder %v3033_v27, %v3498_v58  ;;  %v1254_v24 = vsub.f32 %v2454_v19, %v2582_v23  ;;  %v2577_v34 = vsel %vm865_vm10, 1.0, %v2912_v33  ;;  %vm867_vm12 = vcmp.eq.s32.totalorder %v3035_v28, %v3498_v58  ;;  %v1459_v19 = vld [vmem:[%s2983_s28 + $0x90] sm:$0xff] }
  0x78   : > { %1312 = vmatpush2.msra.mxu0 %v1252_v14  ;;  %v2451_v35 = vsel %vm467_vm11, 1.0, %v2912_v33  ;;  %v1249_v12 = vsub.f32 %v2449_v17, %v2577_v34  ;;  %v2579_v36 = vsel %vm867_vm12, 1.0, %v2912_v33  ;;  %vm464_vm8 = vcmp.eq.s32.totalorder %v3038_v29, %v3498_v58  ;;  %1668 = vperm.xlu1 %2874, %v1494_v9  }
  0x79   : > { %vm864_vm13 = vcmp.eq.s32.totalorder %v3041_v30, %v3498_v58  ;;  %1383 = vmatpush2.msra.mxu1 %v1254_v24  ;;  %v1251_v37 = vsub.f32 %v2451_v35, %v2579_v36  ;;  %v2448_v38 = vsel %vm464_vm8, 1.0, %v2912_v33  ;;  %vm466_vm14 = vcmp.eq.s32.totalorder %v3043_v31, %v3498_v58  ;;  %v1490_v35 = vld [vmem:[%s2983_s28 + $0x188] sm:$0xff] }
  0x7a   : > { %v2576_v39 = vsel %vm864_vm13, 1.0, %v2912_v33  ;;  %1313 = vmatprep.subr.mxu0 %v1249_v12  ;;  %v2450_v42 = vsel %vm466_vm14, 1.0, %v2912_v33  ;;  %vm866_vm15 = vcmp.eq.s32.totalorder %v3045_v32, %v3498_v58  ;;  %vm461_vm0 = vcmp.eq.s32.totalorder %v3028_v25, %v3501_v59  ;;  %1572 = vperm.xlu0 %2873, %v1462_v40  }
  0x7b   : > { %v1248_v41 = vsub.f32 %v2448_v38, %v2576_v39  ;;  %1384 = vmatprep.subr.mxu1 %v1251_v37  ;;  %v2578_v43 = vsel %vm866_vm15, 1.0, %v2912_v33  ;;  %v2445_v18 = vsel %vm461_vm0, 1.0, %v2912_v33  ;;  %vm861_vm1 = vcmp.eq.s32.totalorder %v3031_v26, %v3501_v59  ;;  %v1458_v37 = vld [vmem:[%s2983_s28 + $0x88] sm:$0xff] }
  0x7c   : > { %vm463_vm2 = vcmp.eq.s32.totalorder %v3033_v27, %v3501_v59  ;;  %v1250_v44 = vsub.f32 %v2450_v42, %v2578_v43  ;;  %v2573_v45 = vsel %vm861_vm1, 1.0, %v2912_v33  ;;  %vm863_vm3 = vcmp.eq.s32.totalorder %v3035_v28, %v3501_v59  ;;  %1665 = vperm.xlu1 %2874, %v1493_v47  }
  0x7d   : > { %1314 = vmatpush2.msra.mxu0 %v1248_v41  ;;  %v2447_v46 = vsel %vm463_vm2, 1.0, %v2912_v33  ;;  %v1245_v48 = vsub.f32 %v2445_v18, %v2573_v45  ;;  %v2575_v15 = vsel %vm863_vm3, 1.0, %v2912_v33  ;;  %vm460_vm4 = vcmp.eq.s32.totalorder %v3038_v29, %v3501_v59 }
  0x7e   : > { %vm860_vm5 = vcmp.eq.s32.totalorder %v3041_v30, %v3501_v59  ;;  %1385 = vmatpush2.msra.mxu1 %v1250_v44  ;;  %v1247_v50 = vsub.f32 %v2447_v46, %v2575_v15  ;;  %v2444_v10 = vsel %vm460_vm4, 1.0, %v2912_v33  ;;  %vm462_vm6 = vcmp.eq.s32.totalorder %v3043_v31, %v3501_v59  ;;  %1569 = vperm.xlu0 %2873, %v1461_v49   ;;  %v1489_v44 = vld [vmem:[%s2983_s28 + $0x180] sm:$0xff] }
  0x7f   : > { %v2572_v51 = vsel %vm860_vm5, 1.0, %v2912_v33  ;;  %1315 = vmatprep.subr.mxu0 %v1245_v48  ;;  %v2446_v53 = vsel %vm462_vm6, 1.0, %v2912_v33  ;;  %vm862_vm7 = vcmp.eq.s32.totalorder %v3045_v32, %v3501_v59  ;;  %vm457_vm9 = vcmp.eq.s32.totalorder %v3028_v25, %v3504_v60  ;;  %v1460_v59 = vld [vmem:[%s2983_s28 + $0x98] sm:$0xff]  ;;  %v1457_v15 = vld [vmem:[%s2983_s28 + $0x80] sm:$0xff] }
  0x80   : > { %v1244_v52 = vsub.f32 %v2444_v10, %v2572_v51  ;;  %1386 = vmatprep.subr.mxu1 %v1247_v50  ;;  %v2574_v54 = vsel %vm862_vm7, 1.0, %v2912_v33  ;;  %v2441_v55 = vsel %vm457_vm9, 1.0, %v2912_v33  ;;  %vm857_vm10 = vcmp.eq.s32.totalorder %v3031_v26, %v3504_v60  ;;  %1662 = vperm.xlu1 %2874, %v1492_v21  }
  0x81   : > { %vm459_vm11 = vcmp.eq.s32.totalorder %v3033_v27, %v3504_v60  ;;  %v1246_v56 = vsub.f32 %v2446_v53, %v2574_v54  ;;  %v2569_v57 = vsel %vm857_vm10, 1.0, %v2912_v33  ;;  %vm859_vm12 = vcmp.eq.s32.totalorder %v3035_v28, %v3504_v60 }
  0x82   : > { %1316 = vmatpush2.msra.mxu0 %v1244_v52  ;;  %v2443_v58 = vsel %vm459_vm11, 1.0, %v2912_v33  ;;  %v1241_v61 = vsub.f32 %v2441_v55, %v2569_v57  ;;  %v2571_v16 = vsel %vm859_vm12, 1.0, %v2912_v33  ;;  %vm456_vm8 = vcmp.eq.s32.totalorder %v3038_v29, %v3504_v60  ;;  %1566 = vperm.xlu0 %2873, %v1460_v59  }
  0x83   : > { %vm856_vm13 = vcmp.eq.s32.totalorder %v3041_v30, %v3504_v60  ;;  %1387 = vmatpush2.msra.mxu1 %v1246_v56  ;;  %v1243_v62 = vsub.f32 %v2443_v58, %v2571_v16  ;;  %v2440_v63 = vsel %vm456_vm8, 1.0, %v2912_v33  ;;  %vm458_vm14 = vcmp.eq.s32.totalorder %v3043_v31, %v3504_v60 }
  0x84   : > { %v2568_v11 = vsel %vm856_vm13, 1.0, %v2912_v33  ;;  %1317 = vmatprep.subr.mxu0 %v1241_v61  ;;  %v2442_v3 = vsel %vm458_vm14, 1.0, %v2912_v33  ;;  %vm858_vm15 = vcmp.eq.s32.totalorder %v3045_v32, %v3504_v60  ;;  %v329_v7 = vadd.s32 200, %v2964_v2  ;;  %1659 = vperm.xlu1 %2874, %v1491_v8  }
  0x85   : > { %v1240_v1 = vsub.f32 %v2440_v63, %v2568_v11  ;;  %1388 = vmatprep.subr.mxu1 %v1243_v62  ;;  %v2570_v13 = vsel %vm858_vm15, 1.0, %v2912_v33  ;;  %v3607_v22 = vadd.s32 192, %v2964_v2  ;;  %v3610_v0 = vadd.s32 184, %v2964_v2 }
  0x86   : > { %v3613_v14 = vadd.s32 176, %v2964_v2  ;;  %v1242_v60 = vsub.f32 %v2442_v3, %v2570_v13  ;;  %vm453_vm0 = vcmp.eq.s32.totalorder %v3028_v25, %v329_v7  ;;  %vm853_vm1 = vcmp.eq.s32.totalorder %v3031_v26, %v329_v7  ;;  %1563 = vperm.xlu0 %2873, %v1459_v19  }
  0x87   : > { %1318 = vmatpush2.msra.mxu0 %v1240_v1  ;;  %vm455_vm2 = vcmp.eq.s32.totalorder %v3033_v27, %v329_v7  ;;  %v2437_v20 = vsel %vm453_vm0, 1.0, %v2912_v33  ;;  %v2565_v23 = vsel %vm853_vm1, 1.0, %v2912_v33  ;;  %vm855_vm3 = vcmp.eq.s32.totalorder %v3035_v28, %v329_v7 }
  0x88   : > { %v2439_v17 = vsel %vm455_vm2, 1.0, %v2912_v33  ;;  %1389 = vmatpush2.msra.mxu1 %v1242_v60  ;;  %v1237_v24 = vsub.f32 %v2437_v20, %v2565_v23  ;;  %v2567_v34 = vsel %vm855_vm3, 1.0, %v2912_v33  ;;  %vm452_vm4 = vcmp.eq.s32.totalorder %v3038_v29, %v329_v7  ;;  %1656 = vperm.xlu1 %2874, %v1490_v35  }
  0x89   : > { %vm852_vm5 = vcmp.eq.s32.totalorder %v3041_v30, %v329_v7  ;;  %v1239_v12 = vsub.f32 %v2439_v17, %v2567_v34  ;;  %v2436_v36 = vsel %vm452_vm4, 1.0, %v2912_v33  ;;  %vm454_vm6 = vcmp.eq.s32.totalorder %v3043_v31, %v329_v7 }
  0x8a   : > { %v2564_v9 = vsel %vm852_vm5, 1.0, %v2912_v33  ;;  %1319 = vmatprep.subr.mxu0 %v1237_v24  ;;  %v2438_v39 = vsel %vm454_vm6, 1.0, %v2912_v33  ;;  %vm854_vm7 = vcmp.eq.s32.totalorder %v3045_v32, %v329_v7  ;;  %vm449_vm9 = vcmp.eq.s32.totalorder %v3028_v25, %v3607_v22  ;;  %1560 = vperm.xlu0 %2873, %v1458_v37   ;;  %v3651_v47 = vpop.permute.xlu0 %1554  ;;  %v3653_v48 = vpop.permute.xlu1 %1551 }
  0x8b   : > { %v1236_v38 = vsub.f32 %v2436_v36, %v2564_v9  ;;  %1390 = vmatprep.subr.mxu1 %v1239_v12  ;;  %v2566_v40 = vsel %vm854_vm7, 1.0, %v2912_v33  ;;  %v2433_v41 = vsel %vm449_vm9, 1.0, %v2912_v33  ;;  %vm849_vm10 = vcmp.eq.s32.totalorder %v3031_v26, %v3607_v22 }
  0x8c   : > { %vm451_vm11 = vcmp.eq.s32.totalorder %v3033_v27, %v3607_v22  ;;  %v1238_v42 = vsub.f32 %v2438_v39, %v2566_v40  ;;  %v2561_v43 = vsel %vm849_vm10, 1.0, %v2912_v33  ;;  %vm851_vm12 = vcmp.eq.s32.totalorder %v3035_v28, %v3607_v22  ;;  %1653 = vperm.xlu1 %2874, %v1489_v44  }
  0x8d   : > { %1320 = vmatpush2.msra.mxu0 %v1236_v38  ;;  %v2435_v18 = vsel %vm451_vm11, 1.0, %v2912_v33  ;;  %v1233_v45 = vsub.f32 %v2433_v41, %v2561_v43  ;;  %v2563_v46 = vsel %vm851_vm12, 1.0, %v2912_v33  ;;  %vm448_vm8 = vcmp.eq.s32.totalorder %v3038_v29, %v3607_v22 }
  0x8e   : > { %vm848_vm13 = vcmp.eq.s32.totalorder %v3041_v30, %v3607_v22  ;;  %1391 = vmatpush2.msra.mxu1 %v1238_v42  ;;  %v1235_v49 = vsub.f32 %v2435_v18, %v2563_v46  ;;  %v2432_v50 = vsel %vm448_vm8, 1.0, %v2912_v33  ;;  %vm450_vm14 = vcmp.eq.s32.totalorder %v3043_v31, %v3607_v22  ;;  %1557 = vperm.xlu0 %2873, %v1457_v15   ;;  %v3675_v57 = vpop.permute.xlu0 %1650 }
  0x8f   : > { %v2560_v10 = vsel %vm848_vm13, 1.0, %v2912_v33  ;;  %1321 = vmatprep.subr.mxu0 %v1233_v45  ;;  %v2434_v52 = vsel %vm450_vm14, 1.0, %v2912_v33  ;;  %vm850_vm15 = vcmp.eq.s32.totalorder %v3045_v32, %v3607_v22  ;;  %vm445_vm0 = vcmp.eq.s32.totalorder %v3028_v25, %v3610_v0  ;;  %v3677_v58 = vpop.permute.xlu1 %1647 }
  0x90   : > { %v1232_v51 = vsub.f32 %v2432_v50, %v2560_v10  ;;  %1392 = vmatprep.subr.mxu1 %v1235_v49  ;;  %v2562_v53 = vsel %vm850_vm15, 1.0, %v2912_v33  ;;  %v2429_v54 = vsel %vm445_vm0, 1.0, %v2912_v33  ;;  %vm845_vm1 = vcmp.eq.s32.totalorder %v3031_v26, %v3610_v0 }
  0x91   : > { %vm447_vm2 = vcmp.eq.s32.totalorder %v3033_v27, %v3610_v0  ;;  %v1234_v55 = vsub.f32 %v2434_v52, %v2562_v53  ;;  %v2557_v21 = vsel %vm845_vm1, 1.0, %v2912_v33  ;;  %vm847_vm3 = vcmp.eq.s32.totalorder %v3035_v28, %v3610_v0 }
  0x92   : > { %1322 = vmatpush2.msra.mxu0 %v1232_v51  ;;  %v2431_v56 = vsel %vm447_vm2, 1.0, %v2912_v33  ;;  %v1229_v59 = vsub.f32 %v2429_v54, %v2557_v21  ;;  %v2559_v61 = vsel %vm847_vm3, 1.0, %v2912_v33  ;;  %vm444_vm4 = vcmp.eq.s32.totalorder %v3038_v29, %v3610_v0  ;;  %v3701_v13 = vpop.permute.xlu0 %1548 }
  0x93   : > { %vm844_vm5 = vcmp.eq.s32.totalorder %v3041_v30, %v3610_v0  ;;  %1393 = vmatpush2.msra.mxu1 %v1234_v55  ;;  %v1231_v16 = vsub.f32 %v2431_v56, %v2559_v61  ;;  %v2428_v62 = vsel %vm444_vm4, 1.0, %v2912_v33  ;;  %vm446_vm6 = vcmp.eq.s32.totalorder %v3043_v31, %v3610_v0  ;;  %v3699_v8 = vpop.permute.xlu1 %1644 }
  0x94   : > { %v2556_v63 = vsel %vm844_vm5, 1.0, %v2912_v33  ;;  %1323 = vmatprep.subr.mxu0 %v1229_v59  ;;  %v2430_v1 = vsel %vm446_vm6, 1.0, %v2912_v33  ;;  %vm846_vm7 = vcmp.eq.s32.totalorder %v3045_v32, %v3610_v0  ;;  %vm441_vm9 = vcmp.eq.s32.totalorder %v3028_v25, %v3613_v14 }
  0x95   : > { %v1228_v11 = vsub.f32 %v2428_v62, %v2556_v63  ;;  %1394 = vmatprep.subr.mxu1 %v1231_v16  ;;  %v2558_v3 = vsel %vm846_vm7, 1.0, %v2912_v33  ;;  %v2425_v7 = vsel %vm441_vm9, 1.0, %v2912_v33  ;;  %vm841_vm10 = vcmp.eq.s32.totalorder %v3031_v26, %v3613_v14 }
  0x96   : > { %vm443_vm11 = vcmp.eq.s32.totalorder %v3033_v27, %v3613_v14  ;;  %v1230_v22 = vsub.f32 %v2430_v1, %v2558_v3  ;;  %v2553_v0 = vsel %vm841_vm10, 1.0, %v2912_v33  ;;  %vm843_vm12 = vcmp.eq.s32.totalorder %v3035_v28, %v3613_v14  ;;  %v3730_v40 = vpop.permute.xlu0 %1545 }
  0x97   : > { %1324 = vmatpush2.msra.mxu0 %v1228_v11  ;;  %v2427_v19 = vsel %vm443_vm11, 1.0, %v2912_v33  ;;  %v1225_v60 = vsub.f32 %v2425_v7, %v2553_v0  ;;  %v2555_v20 = vsel %vm843_vm12, 1.0, %v2912_v33  ;;  %vm440_vm8 = vcmp.eq.s32.totalorder %v3038_v29, %v3613_v14  ;;  %v3720_v36 = vpop.permute.xlu1 %1641 }
  0x98   : > { %vm840_vm13 = vcmp.eq.s32.totalorder %v3041_v30, %v3613_v14  ;;  %1395 = vmatpush2.msra.mxu1 %v1230_v22  ;;  %v1227_v23 = vsub.f32 %v2427_v19, %v2555_v20  ;;  %v2424_v17 = vsel %vm440_vm8, 1.0, %v2912_v33  ;;  %vm442_vm14 = vcmp.eq.s32.totalorder %v3043_v31, %v3613_v14 }
  0x99   : > { %v2552_v24 = vsel %vm840_vm13, 1.0, %v2912_v33  ;;  %1325 = vmatprep.subr.mxu0 %v1225_v60  ;;  %v2426_v35 = vsel %vm442_vm14, 1.0, %v2912_v33  ;;  %vm842_vm15 = vcmp.eq.s32.totalorder %v3045_v32, %v3613_v14  ;;  %v325_v12 = vadd.s32 168, %v2964_v2 }
  0x9a   : > { %v1224_v34 = vsub.f32 %v2424_v17, %v2552_v24  ;;  %1396 = vmatprep.subr.mxu1 %v1227_v23  ;;  %v2554_v9 = vsel %vm842_vm15, 1.0, %v2912_v33  ;;  %v324_v37 = vadd.s32 160, %v2964_v2  ;;  %v3725_v38 = vadd.s32 152, %v2964_v2  ;;  %v3747_v50 = vpop.permute.xlu0 %1542 }
  0x9b   : > { %v3728_v39 = vadd.s32 144, %v2964_v2  ;;  %v1226_v41 = vsub.f32 %v2426_v35, %v2554_v9  ;;  %vm437_vm0 = vcmp.eq.s32.totalorder %v3028_v25, %v325_v12  ;;  %vm837_vm1 = vcmp.eq.s32.totalorder %v3031_v26, %v325_v12  ;;  %v3742_v45 = vpop.permute.xlu1 %1638 }
  0x9c   : > { %1326 = vmatpush2.msra.mxu0 %v1224_v34  ;;  %vm439_vm2 = vcmp.eq.s32.totalorder %v3033_v27, %v325_v12  ;;  %v2421_v14 = vsel %vm437_vm0, 1.0, %v2912_v33  ;;  %v2549_v42 = vsel %vm837_vm1, 1.0, %v2912_v33  ;;  %vm839_vm3 = vcmp.eq.s32.totalorder %v3035_v28, %v325_v12 }
  0x9d   : > { %v2423_v43 = vsel %vm439_vm2, 1.0, %v2912_v33  ;;  %1397 = vmatpush2.msra.mxu1 %v1226_v41  ;;  %v1221_v18 = vsub.f32 %v2421_v14, %v2549_v42  ;;  %v2551_v44 = vsel %vm839_vm3, 1.0, %v2912_v33  ;;  %vm436_vm4 = vcmp.eq.s32.totalorder %v3038_v29, %v325_v12 }
  0x9e   : > { %vm836_vm5 = vcmp.eq.s32.totalorder %v3041_v30, %v325_v12  ;;  %v1223_v46 = vsub.f32 %v2423_v43, %v2551_v44  ;;  %v2420_v15 = vsel %vm436_vm4, 1.0, %v2912_v33  ;;  %vm438_vm6 = vcmp.eq.s32.totalorder %v3043_v31, %v325_v12  ;;  %v3764_v16 = vpop.permute.xlu0 %1539 }
  0x9f   : > { %v2548_v49 = vsel %vm836_vm5, 1.0, %v2912_v33  ;;  %1327 = vmatprep.subr.mxu0 %v1221_v18  ;;  %v2422_v51 = vsel %vm438_vm6, 1.0, %v2912_v33  ;;  %vm838_vm7 = vcmp.eq.s32.totalorder %v3045_v32, %v325_v12  ;;  %vm433_vm9 = vcmp.eq.s32.totalorder %v3028_v25, %v324_v37  ;;  %v3759_v56 = vpop.permute.xlu1 %1635 }
  0xa0   : > { %v1220_v10 = vsub.f32 %v2420_v15, %v2548_v49  ;;  %1398 = vmatprep.subr.mxu1 %v1223_v46  ;;  %v2550_v52 = vsel %vm838_vm7, 1.0, %v2912_v33  ;;  %v2417_v53 = vsel %vm433_vm9, 1.0, %v2912_v33  ;;  %vm833_vm10 = vcmp.eq.s32.totalorder %v3031_v26, %v324_v37  ;;  %v300_v49 = vld [vmem:[%s4284_s0] sm:$0x3] }
  0xa1   : > { %vm435_vm11 = vcmp.eq.s32.totalorder %v3033_v27, %v324_v37  ;;  %v1222_v54 = vsub.f32 %v2422_v51, %v2550_v52  ;;  %v2545_v55 = vsel %vm833_vm10, 1.0, %v2912_v33  ;;  %vm835_vm12 = vcmp.eq.s32.totalorder %v3035_v28, %v324_v37 }
  0xa2   : > { %1328 = vmatpush2.msra.mxu0 %v1220_v10  ;;  %v2419_v21 = vsel %vm435_vm11, 1.0, %v2912_v33  ;;  %v1217_v59 = vsub.f32 %v2417_v53, %v2545_v55  ;;  %v2547_v61 = vsel %vm835_vm12, 1.0, %v2912_v33  ;;  %vm432_vm8 = vcmp.eq.s32.totalorder %v3038_v29, %v324_v37  ;;  %v3785_v23 = vpop.permute.xlu0 %1536 }
  0xa3   : > { %vm832_vm13 = vcmp.eq.s32.totalorder %v3041_v30, %v324_v37  ;;  %1399 = vmatpush2.msra.mxu1 %v1222_v54  ;;  %v1219_v62 = vsub.f32 %v2419_v21, %v2547_v61  ;;  %v2416_v63 = vsel %vm432_vm8, 1.0, %v2912_v33  ;;  %vm434_vm14 = vcmp.eq.s32.totalorder %v3043_v31, %v324_v37  ;;  %v3779_v0 = vpop.permute.xlu1 %1632 }
  0xa4   : > { %v2544_v11 = vsel %vm832_vm13, 1.0, %v2912_v33  ;;  %1329 = vmatprep.subr.mxu0 %v1217_v59  ;;  %v2418_v3 = vsel %vm434_vm14, 1.0, %v2912_v33  ;;  %vm834_vm15 = vcmp.eq.s32.totalorder %v3045_v32, %v324_v37  ;;  %vm429_vm0 = vcmp.eq.s32.totalorder %v3028_v25, %v3725_v38 }
  0xa5   : > { %v1216_v1 = vsub.f32 %v2416_v63, %v2544_v11  ;;  %1400 = vmatprep.subr.mxu1 %v1219_v62  ;;  %v2546_v7 = vsel %vm834_vm15, 1.0, %v2912_v33  ;;  %v2413_v22 = vsel %vm429_vm0, 1.0, %v2912_v33  ;;  %vm829_vm1 = vcmp.eq.s32.totalorder %v3031_v26, %v3725_v38 }
  0xa6   : > { %vm431_vm2 = vcmp.eq.s32.totalorder %v3033_v27, %v3725_v38  ;;  %v1218_v19 = vsub.f32 %v2418_v3, %v2546_v7  ;;  %v2541_v60 = vsel %vm829_vm1, 1.0, %v2912_v33  ;;  %vm831_vm3 = vcmp.eq.s32.totalorder %v3035_v28, %v3725_v38  ;;  %v3809_v43 = vpop.permute.xlu0 %1533 }
  0xa7   : > { %1330 = vmatpush2.msra.mxu0 %v1216_v1  ;;  %v2415_v20 = vsel %vm431_vm2, 1.0, %v2912_v33  ;;  %v1213_v17 = vsub.f32 %v2413_v22, %v2541_v60  ;;  %v2543_v24 = vsel %vm831_vm3, 1.0, %v2912_v33  ;;  %vm428_vm4 = vcmp.eq.s32.totalorder %v3038_v29, %v3725_v38  ;;  %v3801_v41 = vpop.permute.xlu1 %1629 }
  0xa8   : > { %vm828_vm5 = vcmp.eq.s32.totalorder %v3041_v30, %v3725_v38  ;;  %1401 = vmatpush2.msra.mxu1 %v1218_v19  ;;  %v1215_v34 = vsub.f32 %v2415_v20, %v2543_v24  ;;  %v2412_v35 = vsel %vm428_vm4, 1.0, %v2912_v33  ;;  %vm430_vm6 = vcmp.eq.s32.totalorder %v3043_v31, %v3725_v38 }
  0xa9   : > { %v2540_v12 = vsel %vm828_vm5, 1.0, %v2912_v33  ;;  %1331 = vmatprep.subr.mxu0 %v1213_v17  ;;  %v2414_v37 = vsel %vm430_vm6, 1.0, %v2912_v33  ;;  %vm830_vm7 = vcmp.eq.s32.totalorder %v3045_v32, %v3725_v38  ;;  %vm425_vm9 = vcmp.eq.s32.totalorder %v3028_v25, %v3728_v39 }
  0xaa   : > { %v1212_v9 = vsub.f32 %v2412_v35, %v2540_v12  ;;  %1402 = vmatprep.subr.mxu1 %v1215_v34  ;;  %v2542_v14 = vsel %vm830_vm7, 1.0, %v2912_v33  ;;  %v2409_v42 = vsel %vm425_vm9, 1.0, %v2912_v33  ;;  %vm825_vm10 = vcmp.eq.s32.totalorder %v3031_v26, %v3728_v39  ;;  %v3833_v59 = vpop.permute.xlu0 %1530 }
  0xab   : > { %vm427_vm11 = vcmp.eq.s32.totalorder %v3033_v27, %v3728_v39  ;;  %v1214_v38 = vsub.f32 %v2414_v37, %v2542_v14  ;;  %v2537_v18 = vsel %vm825_vm10, 1.0, %v2912_v33  ;;  %vm827_vm12 = vcmp.eq.s32.totalorder %v3035_v28, %v3728_v39  ;;  %v3827_v53 = vpop.permute.xlu1 %1626 }
  0xac   : > { %1332 = vmatpush2.msra.mxu0 %v1212_v9  ;;  %v2411_v44 = vsel %vm427_vm11, 1.0, %v2912_v33  ;;  %v1209_v46 = vsub.f32 %v2409_v42, %v2537_v18  ;;  %v2539_v15 = vsel %vm827_vm12, 1.0, %v2912_v33  ;;  %vm424_vm8 = vcmp.eq.s32.totalorder %v3038_v29, %v3728_v39 }
  0xad   : > { %vm824_vm13 = vcmp.eq.s32.totalorder %v3041_v30, %v3728_v39  ;;  %1403 = vmatpush2.msra.mxu1 %v1214_v38  ;;  %v1211_v10 = vsub.f32 %v2411_v44, %v2539_v15  ;;  %v2408_v51 = vsel %vm424_vm8, 1.0, %v2912_v33  ;;  %vm426_vm14 = vcmp.eq.s32.totalorder %v3043_v31, %v3728_v39 }
  0xae   : > { %v2536_v52 = vsel %vm824_vm13, 1.0, %v2912_v33  ;;  %1333 = vmatprep.subr.mxu0 %v1209_v46  ;;  %v2410_v55 = vsel %vm426_vm14, 1.0, %v2912_v33  ;;  %vm826_vm15 = vcmp.eq.s32.totalorder %v3045_v32, %v3728_v39  ;;  %v321_v21 = vadd.s32 136, %v2964_v2  ;;  %v3853_v19 = vpop.permute.xlu0 %1527 }
  0xaf   : > { %v1208_v54 = vsub.f32 %v2408_v51, %v2536_v52  ;;  %1404 = vmatprep.subr.mxu1 %v1211_v10  ;;  %v2538_v61 = vsel %vm826_vm15, 1.0, %v2912_v33  ;;  %v320_v62 = vadd.s32 128, %v2964_v2  ;;  %v3838_v63 = vrot.slane %v300_v49, %v2974_v6  ;;  %v3848_v2 = vpop.permute.xlu1 %1623 }
  0xb0   : > { %v1272_v11 = vrot.slane %v300_v49, %v2970_v4  ;;  %v1210_v1 = vsub.f32 %v2410_v55, %v2538_v61  ;;  %vm421_vm0 = vcmp.eq.s32.totalorder %v3028_v25, %v321_v21  ;;  %vm821_vm1 = vcmp.eq.s32.totalorder %v3031_v26, %v321_v21 }
  0xb1   : > { %1334 = vmatpush2.msra.mxu0 %v1208_v54  ;;  %vm423_vm2 = vcmp.eq.s32.totalorder %v3033_v27, %v321_v21  ;;  %v2405_v39 = vsel %vm421_vm0, 1.0, %v2912_v33  ;;  %v2533_v3 = vsel %vm821_vm1, 1.0, %v2912_v33  ;;  %vm823_vm3 = vcmp.eq.s32.totalorder %v3035_v28, %v321_v21 }
  0xb2   : > { %v2407_v7 = vsel %vm423_vm2, 1.0, %v2912_v33  ;;  %1339 = vmatprep.mubr.f32.mxu0 %v1272_v11  ;;  %1410 = vmatprep.mubr.f32.mxu1 %v1272_v11  ;;  %v1205_v4 = vsub.f32 %v2405_v39, %v2533_v3  ;;  %v2535_v22 = vsel %vm823_vm3, 1.0, %v2912_v33  ;;  %vm420_vm4 = vcmp.eq.s32.totalorder %v3038_v29, %v321_v21 }
  0xb3   : > { %1405 = vmatpush2.msra.mxu1 %v1210_v1  ;;  %vm820_vm5 = vcmp.eq.s32.totalorder %v3041_v30, %v321_v21  ;;  %v1207_v60 = vsub.f32 %v2407_v7, %v2535_v22  ;;  %v2404_v20 = vsel %vm420_vm4, 1.0, %v2912_v33  ;;  %vm422_vm6 = vcmp.eq.s32.totalorder %v3043_v31, %v321_v21  ;;  %v3865_v9 = vpop.permute.xlu1 %1620 }
  0xb4   : > { %v2532_v17 = vsel %vm820_vm5, 1.0, %v2912_v33  ;;  %1335 = vmatprep.subr.mxu0 %v1205_v4  ;;  %v2406_v34 = vsel %vm422_vm6, 1.0, %v2912_v33  ;;  %vm822_vm7 = vcmp.eq.s32.totalorder %v3045_v32, %v321_v21  ;;  %vm417_vm9 = vcmp.eq.s32.totalorder %v3028_v25, %v320_v62  ;;  %v3870_v25 = vpop.permute.xlu0 %1524 }
  0xb5   : > { %v1204_v24 = vsub.f32 %v2404_v20, %v2532_v17  ;;  %1406 = vmatprep.subr.mxu1 %v1207_v60  ;;  %v2534_v35 = vsel %vm822_vm7, 1.0, %v2912_v33  ;;  %v2401_v12 = vsel %vm417_vm9, 1.0, %v2912_v33  ;;  %vm817_vm10 = vcmp.eq.s32.totalorder %v3031_v26, %v320_v62 }
  0xb6   : > { %vm419_vm11 = vcmp.eq.s32.totalorder %v3033_v27, %v320_v62  ;;  %v1206_v37 = vsub.f32 %v2406_v34, %v2534_v35  ;;  %v2529_v14 = vsel %vm817_vm10, 1.0, %v2912_v33  ;;  %vm819_vm12 = vcmp.eq.s32.totalorder %v3035_v28, %v320_v62 }
  0xb7   : > { %1336 = vmatpush2.msra.mxu0 %v1204_v24  ;;  %v2403_v42 = vsel %vm419_vm11, 1.0, %v2912_v33  ;;  %v1201_v38 = vsub.f32 %v2401_v12, %v2529_v14  ;;  %v2531_v18 = vsel %vm819_vm12, 1.0, %v2912_v33  ;;  %vm416_vm8 = vcmp.eq.s32.totalorder %v3038_v29, %v320_v62  ;;  %v3883_v29 = vpop.permute.xlu1 %1617  ;;  %v1418_v12 = vld [vmem:[%s298_s16 + $0x8] sm:$0xff] }
  0xb8   : > { %vm816_vm13 = vcmp.eq.s32.totalorder %v3041_v30, %v320_v62  ;;  %1407 = vmatpush2.msra.mxu1 %v1206_v37  ;;  %v1203_v26 = vsub.f32 %v2403_v42, %v2531_v18  ;;  %v2400_v27 = vsel %vm416_vm8, 1.0, %v2912_v33  ;;  %vm418_vm14 = vcmp.eq.s32.totalorder %v3043_v31, %v320_v62  ;;  %v3886_v49 = vpop.permute.xlu0 %1521 }
  0xb9   : > { %v2528_v44 = vsel %vm816_vm13, 1.0, %v2912_v33  ;;  %1337 = vmatprep.subr.mxu0 %v1201_v38  ;;  %v2402_v28 = vsel %vm418_vm14, 1.0, %v2912_v33  ;;  %vm818_vm15 = vcmp.eq.s32.totalorder %v3045_v32, %v320_v62  ;;  %v3881_v15 = vadd.s32 128, %v3358_v5  ;;  %v1419_v38 = vld [vmem:[%s298_s16 + $0x10] sm:$0xff] }
  0xba   : > { %v1200_v46 = vsub.f32 %v2400_v27, %v2528_v44  ;;  %1408 = vmatprep.subr.mxu1 %v1203_v26  ;;  %v2530_v30 = vsel %vm818_vm15, 1.0, %v2912_v33  ;;  %vm1730_vm1 = vcmp.eq.s32.totalorder %v3651_v47, %v3358_v5  ;;  %vm1794_vm4 = vcmp.eq.s32.totalorder %v3675_v57, %v3358_v5 }
  0xbb   : > { %v1202_v10 = vsub.f32 %v2402_v28, %v2530_v30  ;;  %vm1731_vm0 = vcmp.eq.s32.totalorder %v3651_v47, %v3881_v15  ;;  %vm1795_vm2 = vcmp.eq.s32.totalorder %v3675_v57, %v3881_v15  ;;  %vm1729_vm3 = vcmp.eq.s32.totalorder %v3653_v48, %v3881_v15  ;;  %v3899_v31 = vpop.permute.xlu1 %1614 }
  0xbc   : > { %1338 = vmatpush2.msra.mxu0 %v1200_v46  ;;  %vm1728_vm5 = vcmp.eq.s32.totalorder %v3653_v48, %v3358_v5  ;;  %vm1793_vm6 = vcmp.eq.s32.totalorder %v3677_v58, %v3881_v15  ;;  %v2913_v32 = vmov 1.0   ;;  %v3907_v33 = vpop.permute.xlu0 %1518  ;;  %vm1792_vm7 = vcmp.eq.s32.totalorder %v3677_v58, %v3358_v5 }
  0xbd   : > { %1340 = vmatmul.mubr.f32.vlgmr.msra.gmra.mxu0 %v3838_v63  ;;  %1409 = vmatpush2.msra.mxu1 %v1202_v10  ;;  %vm1727_vm9 = vcmp.eq.s32.totalorder %v3701_v13, %v3881_v15  ;;  %vm1791_vm10 = vcmp.eq.s32.totalorder %v3699_v8, %v3881_v15  ;;  %vm1726_vm11 = vcmp.eq.s32.totalorder %v3701_v13, %v3358_v5 }
  0xbe   : > { %1411 = vmatmul.mubr.f32.vlgmr.msra.gmra.mxu1 %v3838_v63  ;;  %2720 = vmatprep.subr.msk.mxu0 %vm1731_vm0, %v2913_v32  ;;  %vm1790_vm12 = vcmp.eq.s32.totalorder %v3699_v8, %v3358_v5  ;;  %vm1725_vm8 = vcmp.eq.s32.totalorder %v3730_v40, %v3881_v15  ;;  %vm1789_vm13 = vcmp.eq.s32.totalorder %v3720_v36, %v3881_v15 }
  0xbf   : > { %2784 = vmatprep.subr.msk.mxu1 %vm1795_vm2, %v2913_v32  ;;  %2721 = vmatpush1.msk.msra.mxu0 %vm1730_vm1, %v2913_v32  ;;  %v3933_v47 = vpop.permute.xlu1 %1611  ;;  %vm1724_vm14 = vcmp.eq.s32.totalorder %v3730_v40, %v3358_v5  ;;  %vm1788_vm15 = vcmp.eq.s32.totalorder %v3720_v36, %v3358_v5  ;;  %vm1723_vm0 = vcmp.eq.s32.totalorder %v3747_v50, %v3881_v15 }
  0xc0   : > { %2785 = vmatpush1.msk.msra.mxu1 %vm1794_vm4, %v2913_v32  ;;  %2722 = vmatprep.subr.msk.mxu0 %vm1729_vm3, %v2913_v32  ;;  %v3941_v57 = vpop.permute.xlu0 %1515  ;;  %vm1787_vm1 = vcmp.eq.s32.totalorder %v3742_v45, %v3881_v15  ;;  %vm1722_vm2 = vcmp.eq.s32.totalorder %v3747_v50, %v3358_v5  ;;  %vm1786_vm3 = vcmp.eq.s32.totalorder %v3742_v45, %v3358_v5 }
  0xc1   : > { %2786 = vmatprep.subr.msk.mxu1 %vm1793_vm6, %v2913_v32  ;;  %2723 = vmatpush1.msk.msra.mxu0 %vm1728_vm5, %v2913_v32  ;;  %vm1721_vm4 = vcmp.eq.s32.totalorder %v3764_v16, %v3881_v15  ;;  %vm1785_vm5 = vcmp.eq.s32.totalorder %v3759_v56, %v3881_v15  ;;  %vm1720_vm6 = vcmp.eq.s32.totalorder %v3764_v16, %v3358_v5 }
  0xc2   : > { %2787 = vmatpush1.msk.msra.mxu1 %vm1792_vm7, %v2913_v32  ;;  %2724 = vmatprep.subr.msk.mxu0 %vm1727_vm9, %v2913_v32  ;;  %vm1784_vm7 = vcmp.eq.s32.totalorder %v3759_v56, %v3358_v5  ;;  %vm1719_vm9 = vcmp.eq.s32.totalorder %v3785_v23, %v3881_v15 }
  0xc3   : > { %2788 = vmatprep.subr.msk.mxu1 %vm1791_vm10, %v2913_v32  ;;  %2725 = vmatpush1.msk.msra.mxu0 %vm1726_vm11, %v2913_v32  ;;  %v3970_v48 = vpop.permute.xlu1 %1608  ;;  %vm1783_vm10 = vcmp.eq.s32.totalorder %v3779_v0, %v3881_v15  ;;  %vm1718_vm11 = vcmp.eq.s32.totalorder %v3785_v23, %v3358_v5 }
  0xc4   : > { %2789 = vmatpush1.msk.msra.mxu1 %vm1790_vm12, %v2913_v32  ;;  %2726 = vmatprep.subr.msk.mxu0 %vm1725_vm8, %v2913_v32  ;;  %v3978_v58 = vpop.permute.xlu0 %1512  ;;  %vm1782_vm12 = vcmp.eq.s32.totalorder %v3779_v0, %v3358_v5  ;;  %vm1717_vm8 = vcmp.eq.s32.totalorder %v3809_v43, %v3881_v15 }
  0xc5   : > { %2790 = vmatprep.subr.msk.mxu1 %vm1789_vm13, %v2913_v32  ;;  %2727 = vmatpush1.msk.msra.mxu0 %vm1724_vm14, %v2913_v32  ;;  %vm1781_vm13 = vcmp.eq.s32.totalorder %v3801_v41, %v3881_v15  ;;  %vm1716_vm14 = vcmp.eq.s32.totalorder %v3809_v43, %v3358_v5 }
  0xc6   : > { %2791 = vmatpush1.msk.msra.mxu1 %vm1788_vm15, %v2913_v32  ;;  %2728 = vmatprep.subr.msk.mxu0 %vm1723_vm0, %v2913_v32  ;;  %vm1780_vm15 = vcmp.eq.s32.totalorder %v3801_v41, %v3358_v5  ;;  %vm1715_vm0 = vcmp.eq.s32.totalorder %v3833_v59, %v3881_v15 }
  0xc7   : > { %2792 = vmatprep.subr.msk.mxu1 %vm1787_vm1, %v2913_v32  ;;  %2729 = vmatpush1.msk.msra.mxu0 %vm1722_vm2, %v2913_v32  ;;  %v3998_v8 = vpop.permute.xlu1 %1605  ;;  %vm1779_vm1 = vcmp.eq.s32.totalorder %v3827_v53, %v3881_v15  ;;  %vm1714_vm2 = vcmp.eq.s32.totalorder %v3833_v59, %v3358_v5 }
  0xc8   : > { %2793 = vmatpush1.msk.msra.mxu1 %vm1786_vm3, %v2913_v32  ;;  %2730 = vmatprep.subr.msk.mxu0 %vm1721_vm4, %v2913_v32  ;;  %v4006_v13 = vpop.permute.xlu0 %1509  ;;  %vm1778_vm3 = vcmp.eq.s32.totalorder %v3827_v53, %v3358_v5  ;;  %vm1713_vm4 = vcmp.eq.s32.totalorder %v3853_v19, %v3881_v15 }
  0xc9   : > { %2794 = vmatprep.subr.msk.mxu1 %vm1785_vm5, %v2913_v32  ;;  %2731 = vmatpush1.msk.msra.mxu0 %vm1720_vm6, %v2913_v32  ;;  %vm1777_vm5 = vcmp.eq.s32.totalorder %v3848_v2, %v3881_v15  ;;  %vm1712_vm6 = vcmp.eq.s32.totalorder %v3853_v19, %v3358_v5 }
  0xca   : > { %2795 = vmatpush1.msk.msra.mxu1 %vm1784_vm7, %v2913_v32  ;;  %2732 = vmatprep.subr.msk.mxu0 %vm1719_vm9, %v2913_v32  ;;  %vm1776_vm7 = vcmp.eq.s32.totalorder %v3848_v2, %v3358_v5  ;;  %vm1711_vm9 = vcmp.eq.s32.totalorder %v3870_v25, %v3881_v15 }
  0xcb   : > { %2796 = vmatprep.subr.msk.mxu1 %vm1783_vm10, %v2913_v32  ;;  %2733 = vmatpush1.msk.msra.mxu0 %vm1718_vm11, %v2913_v32  ;;  %v4032_v36 = vpop.permute.xlu1 %1698  ;;  %vm1775_vm10 = vcmp.eq.s32.totalorder %v3865_v9, %v3881_v15  ;;  %vm1710_vm11 = vcmp.eq.s32.totalorder %v3870_v25, %v3358_v5  ;;  %v1420_v25 = vld [vmem:[%s298_s16 + $0x18] sm:$0xff] }
  0xcc   : > { %2797 = vmatpush1.msk.msra.mxu1 %vm1782_vm12, %v2913_v32  ;;  %2734 = vmatprep.subr.msk.mxu0 %vm1717_vm8, %v2913_v32  ;;  %v4040_v40 = vpop.permute.xlu0 %1602  ;;  %vm1774_vm12 = vcmp.eq.s32.totalorder %v3865_v9, %v3358_v5  ;;  %vm1709_vm8 = vcmp.eq.s32.totalorder %v3886_v49, %v3881_v15  ;;  %v1417_v9 = vld [vmem:[%s298_s16] sm:$0xff] }
  0xcd   : > { %2798 = vmatprep.subr.msk.mxu1 %vm1781_vm13, %v2913_v32  ;;  %2735 = vmatpush1.msk.msra.mxu0 %vm1716_vm14, %v2913_v32  ;;  %vm1773_vm13 = vcmp.eq.s32.totalorder %v3883_v29, %v3881_v15  ;;  %vm1708_vm14 = vcmp.eq.s32.totalorder %v3886_v49, %v3358_v5 }
  0xce   : > { %2799 = vmatpush1.msk.msra.mxu1 %vm1780_vm15, %v2913_v32  ;;  %2736 = vmatprep.subr.msk.mxu0 %vm1715_vm0, %v2913_v32  ;;  %vm1772_vm15 = vcmp.eq.s32.totalorder %v3883_v29, %v3358_v5  ;;  %vm1707_vm0 = vcmp.eq.s32.totalorder %v3907_v33, %v3881_v15 }
  0xcf   : > { %2800 = vmatprep.subr.msk.mxu1 %vm1779_vm1, %v2913_v32  ;;  %2737 = vmatpush1.msk.msra.mxu0 %vm1714_vm2, %v2913_v32  ;;  %v4060_v45 = vpop.permute.xlu1 %1695  ;;  %vm1771_vm1 = vcmp.eq.s32.totalorder %v3899_v31, %v3881_v15  ;;  %vm1706_vm2 = vcmp.eq.s32.totalorder %v3907_v33, %v3358_v5 }
  0xd0   : > { %2801 = vmatpush1.msk.msra.mxu1 %vm1778_vm3, %v2913_v32  ;;  %2738 = vmatprep.subr.msk.mxu0 %vm1713_vm4, %v2913_v32  ;;  %v1600_v50 = vpop.permute.xlu0 %1599  ;;  %vm1770_vm3 = vcmp.eq.s32.totalorder %v3899_v31, %v3358_v5  ;;  %vm1705_vm4 = vcmp.eq.s32.totalorder %v3941_v57, %v3881_v15 }
  0xd1   : > { %2802 = vmatprep.subr.msk.mxu1 %vm1777_vm5, %v2913_v32  ;;  %2739 = vmatpush1.msk.msra.mxu0 %vm1712_vm6, %v2913_v32  ;;  %vm1769_vm5 = vcmp.eq.s32.totalorder %v3933_v47, %v3881_v15  ;;  %vm1704_vm6 = vcmp.eq.s32.totalorder %v3941_v57, %v3358_v5 }
  0xd2   : > { %2803 = vmatpush1.msk.msra.mxu1 %vm1776_vm7, %v2913_v32  ;;  %2740 = vmatprep.subr.msk.mxu0 %vm1711_vm9, %v2913_v32  ;;  %vm1768_vm7 = vcmp.eq.s32.totalorder %v3933_v47, %v3358_v5  ;;  %vm1703_vm9 = vcmp.eq.s32.totalorder %v3978_v58, %v3881_v15 }
  0xd3   : > { %2804 = vmatprep.subr.msk.mxu1 %vm1775_vm10, %v2913_v32  ;;  %2741 = vmatpush1.msk.msra.mxu0 %vm1710_vm11, %v2913_v32  ;;  %v1693_v56 = vpop.permute.xlu1 %1692  ;;  %vm1767_vm10 = vcmp.eq.s32.totalorder %v3970_v48, %v3881_v15  ;;  %vm1702_vm11 = vcmp.eq.s32.totalorder %v3978_v58, %v3358_v5 }
  0xd4   : > { %2805 = vmatpush1.msk.msra.mxu1 %vm1774_vm12, %v2913_v32  ;;  %2742 = vmatprep.subr.msk.mxu0 %vm1709_vm8, %v2913_v32  ;;  %v1597_v16 = vpop.permute.xlu0 %1596  ;;  %vm1766_vm12 = vcmp.eq.s32.totalorder %v3970_v48, %v3358_v5  ;;  %vm1701_vm8 = vcmp.eq.s32.totalorder %v4006_v13, %v3881_v15 }
  0xd5   : > { %2806 = vmatprep.subr.msk.mxu1 %vm1773_vm13, %v2913_v32  ;;  %2743 = vmatpush1.msk.msra.mxu0 %vm1708_vm14, %v2913_v32  ;;  %vm1765_vm13 = vcmp.eq.s32.totalorder %v3998_v8, %v3881_v15  ;;  %vm1700_vm14 = vcmp.eq.s32.totalorder %v4006_v13, %v3358_v5 }
  0xd6   : > { %2807 = vmatpush1.msk.msra.mxu1 %vm1772_vm15, %v2913_v32  ;;  %2744 = vmatprep.subr.msk.mxu0 %vm1707_vm0, %v2913_v32  ;;  %vm1764_vm15 = vcmp.eq.s32.totalorder %v3998_v8, %v3358_v5  ;;  %vm1763_vm0 = vcmp.eq.s32.totalorder %v4040_v40, %v3881_v15 }
  0xd7   : > { %2808 = vmatprep.subr.msk.mxu1 %vm1771_vm1, %v2913_v32  ;;  %2745 = vmatpush1.msk.msra.mxu0 %vm1706_vm2, %v2913_v32  ;;  %v1690_v0 = vpop.permute.xlu1 %1689  ;;  %vm1827_vm1 = vcmp.eq.s32.totalorder %v4032_v36, %v3881_v15  ;;  %vm1762_vm2 = vcmp.eq.s32.totalorder %v4040_v40, %v3358_v5 }
  0xd8   : > { %2809 = vmatpush1.msk.msra.mxu1 %vm1770_vm3, %v2913_v32  ;;  %2746 = vmatprep.subr.msk.mxu0 %vm1705_vm4, %v2913_v32  ;;  %v1594_v23 = vpop.permute.xlu0 %1593  ;;  %vm1826_vm3 = vcmp.eq.s32.totalorder %v4032_v36, %v3358_v5  ;;  %vm1761_vm4 = vcmp.eq.s32.totalorder %v1600_v50, %v3881_v15 }
  0xd9   : > { %2810 = vmatprep.subr.msk.mxu1 %vm1769_vm5, %v2913_v32  ;;  %2747 = vmatpush1.msk.msra.mxu0 %vm1704_vm6, %v2913_v32  ;;  %vm1825_vm5 = vcmp.eq.s32.totalorder %v4060_v45, %v3881_v15  ;;  %vm1760_vm6 = vcmp.eq.s32.totalorder %v1600_v50, %v3358_v5 }
  0xda   : > { %2811 = vmatpush1.msk.msra.mxu1 %vm1768_vm7, %v2913_v32  ;;  %2748 = vmatprep.subr.msk.mxu0 %vm1703_vm9, %v2913_v32  ;;  %vm1824_vm7 = vcmp.eq.s32.totalorder %v4060_v45, %v3358_v5  ;;  %vm1759_vm9 = vcmp.eq.s32.totalorder %v1597_v16, %v3881_v15 }
  0xdb   : > { %2812 = vmatprep.subr.msk.mxu1 %vm1767_vm10, %v2913_v32  ;;  %2749 = vmatpush1.msk.msra.mxu0 %vm1702_vm11, %v2913_v32  ;;  %v1687_v41 = vpop.permute.xlu1 %1686  ;;  %vm1823_vm10 = vcmp.eq.s32.totalorder %v1693_v56, %v3881_v15  ;;  %vm1758_vm11 = vcmp.eq.s32.totalorder %v1597_v16, %v3358_v5 }
  0xdc   : > { %2813 = vmatpush1.msk.msra.mxu1 %vm1766_vm12, %v2913_v32  ;;  %2750 = vmatprep.subr.msk.mxu0 %vm1701_vm8, %v2913_v32  ;;  %v1591_v43 = vpop.permute.xlu0 %1590  ;;  %vm1822_vm12 = vcmp.eq.s32.totalorder %v1693_v56, %v3358_v5  ;;  %vm1757_vm8 = vcmp.eq.s32.totalorder %v1594_v23, %v3881_v15 }
  0xdd   : > { %2814 = vmatprep.subr.msk.mxu1 %vm1765_vm13, %v2913_v32  ;;  %2751 = vmatpush1.msk.msra.mxu0 %vm1700_vm14, %v2913_v32  ;;  %vm1821_vm13 = vcmp.eq.s32.totalorder %v1690_v0, %v3881_v15  ;;  %vm1756_vm14 = vcmp.eq.s32.totalorder %v1594_v23, %v3358_v5 }
  0xde   : > { %2815 = vmatpush1.msk.msra.mxu1 %vm1764_vm15, %v2913_v32  ;;  %2752 = vmatprep.subr.msk.mxu0 %vm1763_vm0, %v2913_v32  ;;  %vm1820_vm15 = vcmp.eq.s32.totalorder %v1690_v0, %v3358_v5  ;;  %vm1755_vm0 = vcmp.eq.s32.totalorder %v1591_v43, %v3881_v15 }
  0xdf   : > { %2816 = vmatprep.subr.msk.mxu1 %vm1827_vm1, %v2913_v32  ;;  %2753 = vmatpush2.msk.msra.mxu0 %vm1762_vm2, %v2913_v32  ;;  %v1684_v51 = vpop.permute.xlu1 %1683  ;;  %vm1819_vm1 = vcmp.eq.s32.totalorder %v1687_v41, %v3881_v15  ;;  %vm1754_vm2 = vcmp.eq.s32.totalorder %v1591_v43, %v3358_v5 }
  0xe0   : > { %2817 = vmatpush2.msk.msra.mxu1 %vm1826_vm3, %v2913_v32  ;;  %2754 = vmatprep.subr.msk.mxu0 %vm1761_vm4, %v2913_v32  ;;  %vm1818_vm3 = vcmp.eq.s32.totalorder %v1687_v41, %v3358_v5 }
  0xe1   : > { %2818 = vmatprep.subr.msk.mxu1 %vm1825_vm5, %v2913_v32  ;;  %2755 = vmatpush2.msk.msra.mxu0 %vm1760_vm6, %v2913_v32  ;;  %v1588_v52 = vpop.permute.xlu0 %1587  ;;  %vm1817_vm5 = vcmp.eq.s32.totalorder %v1684_v51, %v3881_v15 }
  0xe2   : > { %2819 = vmatpush2.msk.msra.mxu1 %vm1824_vm7, %v2913_v32  ;;  %2756 = vmatprep.subr.msk.mxu0 %vm1759_vm9, %v2913_v32  ;;  %vm1753_vm4 = vcmp.eq.s32.totalorder %v1588_v52, %v3881_v15  ;;  %vm1752_vm6 = vcmp.eq.s32.totalorder %v1588_v52, %v3358_v5  ;;  %vm1816_vm7 = vcmp.eq.s32.totalorder %v1684_v51, %v3358_v5 }
  0xe3   : > { %2820 = vmatprep.subr.msk.mxu1 %vm1823_vm10, %v2913_v32  ;;  %2757 = vmatpush2.msk.msra.mxu0 %vm1758_vm11, %v2913_v32  ;;  %v1681_v53 = vpop.permute.xlu1 %1680 }
  0xe4   : > { %2821 = vmatpush2.msk.msra.mxu1 %vm1822_vm12, %v2913_v32  ;;  %2758 = vmatprep.subr.msk.mxu0 %vm1757_vm8, %v2913_v32  ;;  %vm1815_vm9 = vcmp.eq.s32.totalorder %v1681_v53, %v3881_v15  ;;  %vm1814_vm12 = vcmp.eq.s32.totalorder %v1681_v53, %v3358_v5 }
  0xe5   : > { %2822 = vmatprep.subr.msk.mxu1 %vm1821_vm13, %v2913_v32  ;;  %2759 = vmatpush2.msk.msra.mxu0 %vm1756_vm14, %v2913_v32  ;;  %v1585_v54 = vpop.permute.xlu0 %1584 }
  0xe6   : > { %2823 = vmatpush2.msk.msra.mxu1 %vm1820_vm15, %v2913_v32  ;;  %2760 = vmatprep.subr.msk.mxu0 %vm1755_vm0, %v2913_v32  ;;  %vm1750_vm10 = vcmp.eq.s32.totalorder %v1585_v54, %v3358_v5  ;;  %vm1751_vm11 = vcmp.eq.s32.totalorder %v1585_v54, %v3881_v15 }
  0xe7   : > { %2824 = vmatprep.subr.msk.mxu1 %vm1819_vm1, %v2913_v32  ;;  %2761 = vmatpush2.msk.msra.mxu0 %vm1754_vm2, %v2913_v32  ;;  %v1678_v55 = vpop.permute.xlu1 %1677 }
  0xe8   : > { %2825 = vmatpush2.msk.msra.mxu1 %vm1818_vm3, %v2913_v32  ;;  %2762 = vmatprep.subr.msk.mxu0 %vm1753_vm4, %v2913_v32  ;;  %vm1812_vm8 = vcmp.eq.s32.totalorder %v1678_v55, %v3358_v5  ;;  %vm1813_vm13 = vcmp.eq.s32.totalorder %v1678_v55, %v3881_v15 }
  0xe9   : > { %2826 = vmatprep.subr.msk.mxu1 %vm1817_vm5, %v2913_v32  ;;  %2763 = vmatpush2.msk.msra.mxu0 %vm1752_vm6, %v2913_v32  ;;  %v1582_v21 = vpop.permute.xlu0 %1581 }
  0xea   : > { %2827 = vmatpush2.msk.msra.mxu1 %vm1816_vm7, %v2913_v32  ;;  %2764 = vmatprep.subr.msk.mxu0 %vm1751_vm11, %v2913_v32  ;;  %vm1748_vm14 = vcmp.eq.s32.totalorder %v1582_v21, %v3358_v5  ;;  %vm1749_vm15 = vcmp.eq.s32.totalorder %v1582_v21, %v3881_v15 }
  0xeb   : > { %2828 = vmatprep.subr.msk.mxu1 %vm1815_vm9, %v2913_v32  ;;  %2765 = vmatpush2.msk.msra.mxu0 %vm1750_vm10, %v2913_v32  ;;  %v1675_v59 = vpop.permute.xlu1 %1674 }
  0xec   : > { %2829 = vmatpush2.msk.msra.mxu1 %vm1814_vm12, %v2913_v32  ;;  %2766 = vmatprep.subr.msk.mxu0 %vm1749_vm15, %v2913_v32  ;;  %vm1810_vm0 = vcmp.eq.s32.totalorder %v1675_v59, %v3358_v5  ;;  %vm1811_vm1 = vcmp.eq.s32.totalorder %v1675_v59, %v3881_v15 }
  0xed   : > { %2830 = vmatprep.subr.msk.mxu1 %vm1813_vm13, %v2913_v32  ;;  %2767 = vmatpush2.msk.msra.mxu0 %vm1748_vm14, %v2913_v32  ;;  %v1579_v61 = vpop.permute.xlu0 %1578 }
  0xee   : > { %2831 = vmatpush2.msk.msra.mxu1 %vm1812_vm8, %v2913_v32  ;;  %vm1746_vm2 = vcmp.eq.s32.totalorder %v1579_v61, %v3358_v5  ;;  %vm1747_vm3 = vcmp.eq.s32.totalorder %v1579_v61, %v3881_v15 }
  0xef   : > { %2832 = vmatprep.subr.msk.mxu1 %vm1811_vm1, %v2913_v32  ;;  %2768 = vmatprep.subr.msk.mxu0 %vm1747_vm3, %v2913_v32  ;;  %v1672_v62 = vpop.permute.xlu1 %1671 }
  0xf0   : > { %2833 = vmatpush2.msk.msra.mxu1 %vm1810_vm0, %v2913_v32  ;;  %2769 = vmatpush2.msk.msra.mxu0 %vm1746_vm2, %v2913_v32  ;;  %vm1808_vm4 = vcmp.eq.s32.totalorder %v1672_v62, %v3358_v5  ;;  %vm1809_vm5 = vcmp.eq.s32.totalorder %v1672_v62, %v3881_v15 }
  0xf1   : > { %v1576_v63 = vpop.permute.xlu0 %1575  ;;  %2834 = vmatprep.subr.msk.mxu1 %vm1809_vm5, %v2913_v32 }
  0xf2   : > { %vm1744_vm6 = vcmp.eq.s32.totalorder %v1576_v63, %v3358_v5  ;;  %vm1745_vm7 = vcmp.eq.s32.totalorder %v1576_v63, %v3881_v15  ;;  %2835 = vmatpush2.msk.msra.mxu1 %vm1808_vm4, %v2913_v32 }
  0xf3   : > { %2770 = vmatprep.subr.msk.mxu0 %vm1745_vm7, %v2913_v32  ;;  %v1669_v11 = vpop.permute.xlu1 %1668 }
  0xf4   : > { %2771 = vmatpush2.msk.msra.mxu0 %vm1744_vm6, %v2913_v32  ;;  %vm1806_vm9 = vcmp.eq.s32.totalorder %v1669_v11, %v3358_v5  ;;  %vm1807_vm10 = vcmp.eq.s32.totalorder %v1669_v11, %v3881_v15 }
  0xf5   : > { %v1573_v1 = vpop.permute.xlu0 %1572  ;;  %2836 = vmatprep.subr.msk.mxu1 %vm1807_vm10, %v2913_v32 }
  0xf6   : > { %vm1742_vm11 = vcmp.eq.s32.totalorder %v1573_v1, %v3358_v5  ;;  %vm1743_vm12 = vcmp.eq.s32.totalorder %v1573_v1, %v3881_v15  ;;  %2837 = vmatpush2.msk.msra.mxu1 %vm1806_vm9, %v2913_v32 }
  0xf7   : > { %2772 = vmatprep.subr.msk.mxu0 %vm1743_vm12, %v2913_v32  ;;  %v1666_v39 = vpop.permute.xlu1 %1665 }
  0xf8   : > { %2773 = vmatpush2.msk.msra.mxu0 %vm1742_vm11, %v2913_v32  ;;  %vm1804_vm8 = vcmp.eq.s32.totalorder %v1666_v39, %v3358_v5  ;;  %vm1805_vm13 = vcmp.eq.s32.totalorder %v1666_v39, %v3881_v15 }
  0xf9   : > { %v1570_v3 = vpop.permute.xlu0 %1569  ;;  %2838 = vmatprep.subr.msk.mxu1 %vm1805_vm13, %v2913_v32 }
  0xfa   : > { %vm1740_vm14 = vcmp.eq.s32.totalorder %v1570_v3, %v3358_v5  ;;  %vm1741_vm15 = vcmp.eq.s32.totalorder %v1570_v3, %v3881_v15  ;;  %2839 = vmatpush2.msk.msra.mxu1 %vm1804_vm8, %v2913_v32 }
  0xfb   : > { %2774 = vmatprep.subr.msk.mxu0 %vm1741_vm15, %v2913_v32  ;;  %v1663_v7 = vpop.permute.xlu1 %1662 }
  0xfc   : > { %2775 = vmatpush2.msk.msra.mxu0 %vm1740_vm14, %v2913_v32  ;;  %vm1802_vm0 = vcmp.eq.s32.totalorder %v1663_v7, %v3358_v5  ;;  %vm1803_vm1 = vcmp.eq.s32.totalorder %v1663_v7, %v3881_v15 }
  0xfd   : > { %v1567_v2 = vpop.permute.xlu0 %1566  ;;  %2840 = vmatprep.subr.msk.mxu1 %vm1803_vm1, %v2913_v32 }
  0xfe   : > { %vm1738_vm2 = vcmp.eq.s32.totalorder %v1567_v2, %v3358_v5  ;;  %vm1739_vm3 = vcmp.eq.s32.totalorder %v1567_v2, %v3881_v15  ;;  %2841 = vmatpush2.msk.msra.mxu1 %vm1802_vm0, %v2913_v32 }
  0xff   : > { %2776 = vmatprep.subr.msk.mxu0 %vm1739_vm3, %v2913_v32  ;;  %v1660_v4 = vpop.permute.xlu1 %1659 }
 0x100   : > { %2777 = vmatpush2.msk.msra.mxu0 %vm1738_vm2, %v2913_v32  ;;  %vm1800_vm4 = vcmp.eq.s32.totalorder %v1660_v4, %v3358_v5  ;;  %vm1801_vm5 = vcmp.eq.s32.totalorder %v1660_v4, %v3881_v15 }
 0x101   : > { %v1564_v22 = vpop.permute.xlu0 %1563  ;;  %2842 = vmatprep.subr.msk.mxu1 %vm1801_vm5, %v2913_v32 }
 0x102   : > { %vm1736_vm6 = vcmp.eq.s32.totalorder %v1564_v22, %v3358_v5  ;;  %vm1737_vm7 = vcmp.eq.s32.totalorder %v1564_v22, %v3881_v15  ;;  %2843 = vmatpush2.msk.msra.mxu1 %vm1800_vm4, %v2913_v32 }
 0x103   : > { %2778 = vmatprep.subr.msk.mxu0 %vm1737_vm7, %v2913_v32  ;;  %v1657_v19 = vpop.permute.xlu1 %1656 }
 0x104   : > { %2779 = vmatpush2.msk.msra.mxu0 %vm1736_vm6, %v2913_v32  ;;  %vm1798_vm9 = vcmp.eq.s32.totalorder %v1657_v19, %v3358_v5  ;;  %vm1799_vm10 = vcmp.eq.s32.totalorder %v1657_v19, %v3881_v15 }
 0x105   : > { %v1561_v60 = vpop.permute.xlu0 %1560  ;;  %2844 = vmatprep.subr.msk.mxu1 %vm1799_vm10, %v2913_v32 }
 0x106   : > { %vm1734_vm11 = vcmp.eq.s32.totalorder %v1561_v60, %v3358_v5  ;;  %vm1735_vm12 = vcmp.eq.s32.totalorder %v1561_v60, %v3881_v15  ;;  %2845 = vmatpush2.msk.msra.mxu1 %vm1798_vm9, %v2913_v32 }
 0x107   : > { %2780 = vmatprep.subr.msk.mxu0 %vm1735_vm12, %v2913_v32  ;;  %v1654_v20 = vpop.permute.xlu1 %1653 }
 0x108   : > { %2781 = vmatpush2.msk.msra.mxu0 %vm1734_vm11, %v2913_v32  ;;  %vm1796_vm8 = vcmp.eq.s32.totalorder %v1654_v20, %v3358_v5  ;;  %vm1797_vm13 = vcmp.eq.s32.totalorder %v1654_v20, %v3881_v15 }
 0x109   : > { %v1558_v17 = vpop.permute.xlu0 %1557  ;;  %2846 = vmatprep.subr.msk.mxu1 %vm1797_vm13, %v2913_v32 }
 0x10a   : > { %vm1732_vm14 = vcmp.eq.s32.totalorder %v1558_v17, %v3358_v5  ;;  %vm1733_vm15 = vcmp.eq.s32.totalorder %v1558_v17, %v3881_v15  ;;  %2847 = vmatpush2.msk.msra.mxu1 %vm1796_vm8, %v2913_v32 }
 0x10b   : > { %2782 = vmatprep.subr.msk.mxu0 %vm1733_vm15, %v2913_v32 }
 0x10c   : > { %2783 = vmatpush2.msk.msra.mxu0 %vm1732_vm14, %v2913_v32 }
 0x17d   : > { %v1341_v24 = vpop.f32.mrf.mxu0 }
 0x17e   : > { %v1424_v34 = vrot.slane %v1341_v24, %v2974_v6  ;;  %v1412_v35 = vpop.f32.mrf.mxu1 }
 0x17f   : > { %v1343_v5 = vpop.f32.mrf.mxu0  ;;  %v1432_v14 = vrot.slane %v1412_v35, %v2974_v6 }
 0x180   : > { %v1428_v37 = vrot.slane %v1343_v5, %v2974_v6  ;;  %v1414_v42 = vpop.f32.mrf.mxu1  ;;  %v1437_v27 = vmul.f32 %v1424_v34, %v1417_v9 }
 0x181   : > { %v1436_v26 = vrot.slane %v1414_v42, %v2974_v6  ;;  %v1439_v46 = vmul.f32 %v1432_v14, %v1419_v38 }
 0x182   : > { %v1438_v18 = vmul.f32 %v1428_v37, %v1418_v12 }
 0x183   : > { %v1440_v44 = vmul.f32 %v1436_v26, %v1420_v25 }
 0x184   : > { %2148 = vmatprep.mubr.f32.mxu0 %v1438_v18 }
 0x185   : > { %2149 = vmatmul.mubr.f32.vlgmr.msra.gmra.mxu0 %v1437_v27  ;;  %2219 = vmatprep.mubr.f32.mxu1 %v1440_v44 }
 0x186   : > { %2220 = vmatmul.mubr.f32.vlgmr.msra.gmra.mxu1 %v1439_v46 }
 0x245   : > { %v2150_v28 = vpop.f32.mrf.mxu0  ;;  %2229 = sbr.rel (%p2848_p5) target bundleno = 588 (0x24c), region = 48 }
 0x246   : > { %v2221_v15 = vpop.f32.mrf.mxu1 }
 0x247   : > { %v2152_v29 = vpop.f32.mrf.mxu0  ;;  %v2222_v30 = vadd.f32 %v2221_v15, %v2150_v28 }
 0x248   : > { %v2223_v49 = vpop.f32.mrf.mxu1 }
 0x249   : > { %v2224_v10 = vadd.f32 %v2223_v49, %v2152_v29 }
 0x24a   : > { %v2914_v31 = vmov 0.0  }
 0x24b   : > { %2230 = vst [vmem:[#allocation2] sm:$0xff] %v2914_v31  ;;  %2231 = vst [vmem:[#allocation2 + $0x8] sm:$0xff] %v2914_v31 }
 0x24c PF: > { %p2849_p6 = scmp.ne.s32.totalorder %s2957_s22, 1 }
 0x251   : > { %2241 = sbr.rel (%p2849_p6) target bundleno = 608 (0x260), region = 52 }
 0x252   : > { %v2232_v6 = vld [vmem:[#allocation2] sm:$0xff]  ;;  %v2233_v32 = vld [vmem:[#allocation2 + $0x8] sm:$0xff] }
 0x253   : > { %v2234_v33 = vadd.f32 %v2232_v6, %v2222_v30  ;;  %v2235_v47 = vadd.f32 %v2233_v32, %v2224_v10 }
 0x255   : > { %2236 = vst [vmem:[#allocation2] sm:$0xff] %v2234_v33  ;;  %2237 = vst [vmem:[#allocation2 + $0x8] sm:$0xff] %v2235_v47 }
 0x256   : > { %v2244_v48 = vld [vmem:[%s4289_s5] sm:$0xff]  ;;  %v2245_v13 = vld [vmem:[%s4289_s5 + $0x8] sm:$0xff] }
 0x25c   : > { %v2242_v57 = vld [vmem:[#allocation2] sm:$0xff]  ;;  %v2243_v58 = vld [vmem:[#allocation2 + $0x8] sm:$0xff] }
 0x25d   : > { %v2246_v8 = vmul.f32 %v2244_v48, %v2242_v57  ;;  %v2247_v36 = vmul.f32 %v2245_v13, %v2243_v58 }
 0x25f   : > { %2248 = vst [vmem:[#allocation2] sm:$0xff] %v2246_v8  ;;  %2249 = vst [vmem:[#allocation2 + $0x8] sm:$0xff] %v2247_v36 }
 0x260 PF: > { %p2858_p7 = scmp.eq.s32.totalorder %s2957_s22, 1  ;;  %s2915_s23 = smov [#allocation2]  }
 0x261   : > { %s2257_s24 = sshll.u32 %s2915_s23, 4  ;;  %s2258_s24 = int_to_ptr.vmem [resolvable:$true] %s2257_s24 }
 0x262   : > { %s2875_s25 = scalar_lea.vmem %s2258_s24, 256  ;;  %p2882_p11 = scmp.lt.s32.totalorder %s2258_s24, %s2258_s24 }
 0x263   : > { %p2876_p8 = scmp.ne.s32.totalorder %s2258_s24, %s2875_s25  ;;  %p2883_p12 = scmp.lt.s32.totalorder %s2875_s25, %s2875_s25 }
 0x265   : > { %p2877_p9 = pnand %p2876_p8, %p2858_p7  ;;  %p2884_p13 = por %p2883_p12, %p2882_p11 }
 0x267   : > { %p2878_p10 = pneg %p2877_p9 }
 0x269   : > { %p2885_p0 = pnand %p2884_p13, %p2878_p10 }
 0x26b   : > { %2888 = shalt.err (!%p2885_p0)
}
 0x26c   : > { %2855 = dma.vmem_to_hbm [thread:$0]  (%p2858_p7), %s2258_s24, 256, %s4290_s6, [#allocation3]  }
 0x26d   : > { %2904 = dma.done.wait (%p2858_p7), [#allocation3], 256  }
 0x26e   : > { %2906 = vsyncadd (%p2858_p7), [#allocation3], 4294967040 }
 0x26f PF: > { %s17_s21 = sadd.s32 1, %s2909_s21  }
 0x270   : > { %p14_p1 = scmp.ge.s32.totalorder %s17_s21, 4  }
 0x272   :  { %16 = sbr.rel (!%p14_p1) target bundleno = 1 (0x1), region = 88 }
 0x277   :  { %2270 = vsyncpa [#allocation3], 1 }
 0x278   :  { %2272 = vsyncpa [#allocation3 + $0x1], 1 }

</bundles_post_ra>
